<compile_context>
chip_gen: v7x
topology: tpu7x:2x2x1
jax: 0.10.0
libtpu: 0.0.40
codegen_flags: <defaults>
</compile_context>

<pallas_src>
import functools

import jax
import jax.numpy as jnp
from jax import lax
from jax.experimental import pallas as pl
from jax.experimental.pallas import tpu as pltpu

LOW_THRESHOLD = 0.2
HIGH_THRESHOLD = 0.8
COS_EPS = 1e-8          # F.cosine_similarity default eps
FEAT = 100              # Linear(100, 100)
FEAT_PAD = 128          # lane-aligned feature dim
SLICE = 128             # rows per Gram slice (= gb * n)

# Diagonal removal is folded into the block-diagonal mask: the masked sim has 0
# on the diagonal and the `sim < LOW_THRESHOLD` branch maps it to 0.  This is
# only valid while the low threshold is strictly positive.
assert LOW_THRESHOLD > 0.0


def _graph_learn_kernel(x_ref, w1_ref, b1_ref, w2_ref, b2_ref, mask_ref, adj_ref,
                        out_ref, *, n, gb, r, linear_precision):
    """One grid step = r slices of 128 rows = r*gb graphs of n nodes each.

    x_ref   : (r*128, 128)  node features (f32 or bf16), feature dim zero-padded
    w*_ref  : (128, 128)    pre-transposed Linear weights (resident)
    b*_ref  : (1, 128)      f32 biases
    mask_ref: (128, 128)    f32 block-diagonal mask with the diagonal zeroed
    adj_ref : (n, r*128)    f32, adj_t[i, g*n + j] = adj[g, i, j]  (lane dense)
    out_ref : (n, r*128)    f32, same layout as adj_ref
    """
    gbn = gb * n                                   # == SLICE == 128

    # ---- two Linear + tanh layers over the whole (r*128, 128) block ----
    x = x_ref[...]
    h = jnp.tanh(jnp.dot(x, w1_ref[...], precision=linear_precision,
                         preferred_element_type=jnp.float32) + b1_ref[...])
    h = jnp.tanh(jnp.dot(h.astype(x.dtype), w2_ref[...], precision=linear_precision,
                         preferred_element_type=jnp.float32) + b2_ref[...])

    # ---- cosine similarity: normalize rows once (rsqrt -> EUP slot) ----
    sq = jnp.sum(h * h, axis=-1, keepdims=True)                 # (r*128, 1)
    hn = h * lax.rsqrt(jnp.maximum(sq, COS_EPS * COS_EPS))      # per-vector eps clamp

    mask = mask_ref[...]                                        # (128, 128)

    # ---- per-slice Gram + threshold (short static loop, each slice independent) ----
    for s in range(r):
        lo = s * gbn
        hs = hn[lo:lo + gbn, :]                                 # (128, 128) f32
        # Gram without materializing a transpose; f32/HIGHEST since it feeds thresholds.
        gram = lax.dot_general(hs, hs, (((1,), (1,)), ((), ())),
                               precision=lax.Precision.HIGHEST,
                               preferred_element_type=jnp.float32)
        # sim[i, g*n + j] = gram[g*n + i, g*n + j]  (same-graph only, diagonal -> 0)
        sim = (gram * mask).reshape(gb, n, gbn).sum(axis=0)     # (n, 128)

        adj_s = adj_ref[:, lo:lo + gbn]                         # (n, 128)
        res = jnp.where(sim > HIGH_THRESHOLD, 1.0, adj_s)
        res = jnp.where(sim < LOW_THRESHOLD, 0.0, res)          # also zeroes the diagonal
        out_ref[:, lo:lo + gbn] = res                           # full-lane vst


def graph_learn_forward_batched(semantic_x, adj, w1, b1, w2, b2, *,
                                linear_dtype=jnp.bfloat16, max_slices_per_step=8):
    """semantic_x: (B, N, 100), adj: (B, N, N) -> (B, N, N) f32."""
    b, n, f = semantic_x.shape
    assert f == FEAT
    assert SLICE % n == 0, "node count must divide 128 for the lane-dense layout"
    # TODO(synk): n < 8 puts tiles below the (8,128) granule (untested / relayout-heavy);
    #             prefer n in {8, 16, 32, 64, 128}.
    gb = SLICE // n
    gbn = SLICE
    fp = FEAT_PAD

    linear_dtype = jnp.dtype(linear_dtype)
    linear_precision = (lax.Precision.HIGHEST if linear_dtype == jnp.float32
                        else lax.Precision.DEFAULT)

    # ---- slices-per-step: amortize per-step overhead; keep >= 2 steps for v7x (2 TCs) ----
    slices_total = pl.cdiv(b, gb)
    if slices_total >= 2:
        r = max(1, min(max_slices_per_step, slices_total // 2))
    else:
        r = 1
    num_steps = pl.cdiv(slices_total, r)
    bp = num_steps * r * gb                       # padded graph count

    # ---- host-side layout plumbing (zero pads are exact: zero cols contribute nothing) ----
    # Padded graphs (x = 0) give nonzero h (bias through tanh) but the block-diagonal mask
    # keeps their similarities inside their own block and out[:b] discards them.
    # TODO(synk): for large B keep the (N, B*N) slab layout end-to-end to avoid these
    #             XLA relayout passes (x pad, adj transpose, output transpose).
    x_p = jnp.zeros((bp, n, fp), jnp.float32).at[:b, :, :f].set(semantic_x.astype(jnp.float32))
    x_p = x_p.reshape(bp * n, fp).astype(linear_dtype)

    # PyTorch Linear weights (out, in) -> (in, out), zero-padded to (128,128); biases (1,128) f32.
    w1_t = jnp.zeros((fp, fp), jnp.float32).at[:f, :f].set(w1.T.astype(jnp.float32)).astype(linear_dtype)
    w2_t = jnp.zeros((fp, fp), jnp.float32).at[:f, :f].set(w2.T.astype(jnp.float32)).astype(linear_dtype)
    b1_p = jnp.zeros((1, fp), jnp.float32).at[0, :f].set(b1.astype(jnp.float32))
    b2_p = jnp.zeros((1, fp), jnp.float32).at[0, :f].set(b2.astype(jnp.float32))

    # Lane-dense adjacency slab: adj_t[i, g*n + j] = adj[g, i, j].
    adj_p = jnp.zeros((bp, n, n), jnp.float32).at[:b].set(adj.astype(jnp.float32))
    adj_t = adj_p.transpose(1, 0, 2).reshape(n, bp * n)

    # Block-diagonal selection mask with the diagonal zeroed (folds the diag removal in).
    ids = jnp.arange(gbn, dtype=jnp.int32)
    same_graph = (ids[:, None] // n) == (ids[None, :] // n)
    off_diag = ids[:, None] != ids[None, :]
    blockdiag_mask = (same_graph & off_diag).astype(jnp.float32)      # (128, 128)

    kernel = functools.partial(_graph_learn_kernel, n=n, gb=gb, r=r,
                               linear_precision=linear_precision)

    out_t = pl.pallas_call(
        kernel,
        out_shape=jax.ShapeDtypeStruct((n, bp * n), jnp.float32),
        grid=(num_steps,),
        in_specs=[
            pl.BlockSpec((r * gbn, fp), lambda c: (c, 0)),   # node features of step c
            pl.BlockSpec((fp, fp), lambda c: (0, 0)),        # W1^T (resident)
            pl.BlockSpec((1, fp), lambda c: (0, 0)),         # b1
            pl.BlockSpec((fp, fp), lambda c: (0, 0)),        # W2^T
            pl.BlockSpec((1, fp), lambda c: (0, 0)),         # b2
            pl.BlockSpec((gbn, gbn), lambda c: (0, 0)),      # block-diag mask (resident)
            pl.BlockSpec((n, r * gbn), lambda c: (0, c)),    # adjacency slab of step c
        ],
        out_specs=pl.BlockSpec((n, r * gbn), lambda c: (0, c)),
        compiler_params=pltpu.CompilerParams(
            dimension_semantics=("parallel",),               # shard steps across TCs on v7x
        ),
    )(x_p, w1_t, b1_p, w2_t, b2_p, blockdiag_mask, adj_t)

    # (N, Bp*N) slab -> (Bp, N, N), drop batch padding.
    out = out_t.reshape(n, bp, n).transpose(1, 0, 2)
    return out[:b]


def graph_learn_forward(semantic_x, adj, w1, b1, w2, b2, **kwargs):
    """Single-graph forward, matching the PyTorch module signature."""
    return graph_learn_forward_batched(semantic_x[None], adj[None], w1, b1, w2, b2, **kwargs)[0]


def _reference_batched(x, adj, w1, b1, w2, b2, *, linear_dtype=jnp.float32):
    """Pure-JAX reference mirroring the PyTorch forward (batched).

    linear_dtype=float32 is the PyTorch-faithful path; linear_dtype=bfloat16 mirrors
    the kernel's bf16-operand Linear layers (same rounding) for validating that path.
    """
    linear_dtype = jnp.dtype(linear_dtype)
    prec = lax.Precision.HIGHEST if linear_dtype == jnp.float32 else lax.Precision.DEFAULT
    xd = x.astype(linear_dtype)
    w1d = w1.astype(linear_dtype)
    w2d = w2.astype(linear_dtype)
    h = jnp.tanh(jnp.einsum("bnf,of->bno", xd, w1d, precision=prec,
                            preferred_element_type=jnp.float32) + b1.astype(jnp.float32))
    h = jnp.tanh(jnp.einsum("bnf,of->bno", h.astype(linear_dtype), w2d, precision=prec,
                            preferred_element_type=jnp.float32) + b2.astype(jnp.float32))
    sq = jnp.sum(h * h, axis=-1, keepdims=True)
    hn = h * lax.rsqrt(jnp.maximum(sq, COS_EPS * COS_EPS))
    sim = jnp.einsum("bnd,bmd->bnm", hn, hn, precision=lax.Precision.HIGHEST,
                     preferred_element_type=jnp.float32)
    ms_add = (sim > HIGH_THRESHOLD).astype(jnp.int32)
    ms_rm = (sim < LOW_THRESHOLD).astype(jnp.int32)
    tmp = ms_add | adj.astype(jnp.int32)
    new = tmp ^ (tmp & ms_rm)
    eye = jnp.eye(x.shape[1], dtype=new.dtype)
    new = new * (1 - eye)[None]
    return new.astype(jnp.float32)


if __name__ == "__main__":
    root = jax.random.PRNGKey(0)

    def make_inputs(key, b, n):
        k_x, k_adj, k_w1, k_b1, k_w2, k_b2 = jax.random.split(key, 6)
        x = jax.random.normal(k_x, (b, n, FEAT), dtype=jnp.float32)
        adj = jax.random.bernoulli(k_adj, 0.3, (b, n, n)).astype(jnp.int32)
        bound = 1.0 / jnp.sqrt(jnp.float32(FEAT))     # PyTorch-style Linear init bound
        w1 = jax.random.uniform(k_w1, (FEAT, FEAT), jnp.float32, -bound, bound)
        b1 = jax.random.uniform(k_b1, (FEAT,), jnp.float32, -bound, bound)
        w2 = jax.random.uniform(k_w2, (FEAT, FEAT), jnp.float32, -bound, bound)
        b2 = jax.random.uniform(k_b2, (FEAT,), jnp.float32, -bound, bound)
        return x, adj, w1, b1, w2, b2

    # Config A: B=32, N=8 (gb=16, 2 slices -> r=1, 2 grid steps). Both dtype paths.
    x, adj, w1, b1, w2, b2 = make_inputs(jax.random.fold_in(root, 0), 32, 8)
    out_f32 = jax.block_until_ready(
        graph_learn_forward_batched(x, adj, w1, b1, w2, b2, linear_dtype=jnp.float32))
    ref_f32 = _reference_batched(x, adj, w1, b1, w2, b2, linear_dtype=jnp.float32)
    assert out_f32.shape == (32, 8, 8) and out_f32.dtype == jnp.float32
    assert jnp.array_equal(out_f32, ref_f32), "f32 path does not match reference"

    out_bf16 = jax.block_until_ready(graph_learn_forward_batched(x, adj, w1, b1, w2, b2))
    ref_bf16 = _reference_batched(x, adj, w1, b1, w2, b2, linear_dtype=jnp.bfloat16)
    assert jnp.array_equal(out_bf16, ref_bf16), "bf16-linear path mismatch"

    # Config B: B=96, N=8 (6 slices -> r=3, 2 grid steps): exercises the multi-slice loop.
    x, adj, w1, b1, w2, b2 = make_inputs(jax.random.fold_in(root, 1), 96, 8)
    out_b = jax.block_until_ready(graph_learn_forward_batched(x, adj, w1, b1, w2, b2))
    ref_b = _reference_batched(x, adj, w1, b1, w2, b2, linear_dtype=jnp.bfloat16)
    assert jnp.array_equal(out_b, ref_b), "multi-slice path mismatch"

    # Config C: B=20, N=16 (gb=8, 3 slices -> r=1, 3 steps, 4 zero-padded graphs):
    # padded graphs must not leak into real outputs.
    x, adj, w1, b1, w2, b2 = make_inputs(jax.random.fold_in(root, 2), 20, 16)
    out_c = jax.block_until_ready(graph_learn_forward_batched(x, adj, w1, b1, w2, b2))
    ref_c = _reference_batched(x, adj, w1, b1, w2, b2, linear_dtype=jnp.bfloat16)
    assert jnp.array_equal(out_c, ref_c), "batch-padding path mismatch"

    # Single-graph path (original module signature).
    out1 = jax.block_until_ready(graph_learn_forward(x[0], adj[0], w1, b1, w2, b2))
    assert jnp.array_equal(out1, ref_c[0]), "single-graph path mismatch"

    print("KERNEL_OK")
</pallas_src>

<mosaic_0001>
module attributes {stable_mosaic.version = 11 : i64} {
  func.func @_graph_learn_kernel(%arg0: i32, %arg1: memref<128x128xf32, #tpu.memory_space<vmem>>, %arg2: memref<128x128xf32, #tpu.memory_space<vmem>>, %arg3: memref<1x128xf32, #tpu.memory_space<vmem>>, %arg4: memref<128x128xf32, #tpu.memory_space<vmem>>, %arg5: memref<1x128xf32, #tpu.memory_space<vmem>>, %arg6: memref<128x128xf32, #tpu.memory_space<vmem>>, %arg7: memref<8x128xf32, #tpu.memory_space<vmem>>, %arg8: memref<8x128xf32, #tpu.memory_space<vmem>>) attributes {dimension_semantics = [#tpu.dimension_semantics<parallel>], iteration_bounds = array<i64: 2>, scalar_prefetch = 0 : i64, scratch_operands = 0 : i64, tpu.core_type = #tpu.core_type<tc>, window_params = [{transform_indices = @transform_0, window_bounds = array<i64: 128, 128>}, {pipeline_mode = #tpu.pipeline_mode<synchronous>, transform_indices = @transform_1, window_bounds = array<i64: 128, 128>}, {pipeline_mode = #tpu.pipeline_mode<synchronous>, transform_indices = @transform_2, window_bounds = array<i64: 1, 128>}, {pipeline_mode = #tpu.pipeline_mode<synchronous>, transform_indices = @transform_3, window_bounds = array<i64: 128, 128>}, {pipeline_mode = #tpu.pipeline_mode<synchronous>, transform_indices = @transform_4, window_bounds = array<i64: 1, 128>}, {pipeline_mode = #tpu.pipeline_mode<synchronous>, transform_indices = @transform_5, window_bounds = array<i64: 128, 128>}, {transform_indices = @transform_6, window_bounds = array<i64: 8, 128>}, {transform_indices = @transform_7, window_bounds = array<i64: 8, 128>}]} {
    %c0 = arith.constant 0 : index
    %c0_0 = arith.constant 0 : index
    %0 = vector.load %arg1[%c0, %c0_0] : memref<128x128xf32, #tpu.memory_space<vmem>>, vector<128x128xf32>
    %c0_1 = arith.constant 0 : index
    %c0_2 = arith.constant 0 : index
    %1 = vector.load %arg2[%c0_1, %c0_2] : memref<128x128xf32, #tpu.memory_space<vmem>>, vector<128x128xf32>
    %cst = arith.constant dense<0.000000e+00> : vector<128x128xf32>
    %2 = tpu.matmul %0, %1, %cst {dimension_numbers = #tpu.dot_dimension_numbers<[1], [0], [0], [1], [0, 0, 1, 1], [], []>, precision = #tpu.contract_precision<fp32>} : vector<128x128xf32>, vector<128x128xf32>, vector<128x128xf32> -> vector<128x128xf32>
    %c0_3 = arith.constant 0 : index
    %c0_4 = arith.constant 0 : index
    %3 = vector.load %arg3[%c0_3, %c0_4] : memref<1x128xf32, #tpu.memory_space<vmem>>, vector<1x128xf32>
    %4 = vector.broadcast %3 : vector<1x128xf32> to vector<128x128xf32>
    %5 = arith.addf %2, %4 : vector<128x128xf32>
    %6 = math.tanh %5 : vector<128x128xf32>
    %c0_5 = arith.constant 0 : index
    %c0_6 = arith.constant 0 : index
    %7 = vector.load %arg4[%c0_5, %c0_6] : memref<128x128xf32, #tpu.memory_space<vmem>>, vector<128x128xf32>
    %cst_7 = arith.constant dense<0.000000e+00> : vector<128x128xf32>
    %8 = tpu.matmul %6, %7, %cst_7 {dimension_numbers = #tpu.dot_dimension_numbers<[1], [0], [0], [1], [0, 0, 1, 1], [], []>, precision = #tpu.contract_precision<fp32>} : vector<128x128xf32>, vector<128x128xf32>, vector<128x128xf32> -> vector<128x128xf32>
    %c0_8 = arith.constant 0 : index
    %c0_9 = arith.constant 0 : index
    %9 = vector.load %arg5[%c0_8, %c0_9] : memref<1x128xf32, #tpu.memory_space<vmem>>, vector<1x128xf32>
    %10 = vector.broadcast %9 : vector<1x128xf32> to vector<128x128xf32>
    %11 = arith.addf %8, %10 : vector<128x128xf32>
    %12 = math.tanh %11 : vector<128x128xf32>
    %13 = arith.mulf %12, %12 : vector<128x128xf32>
    %cst_10 = arith.constant dense<0.000000e+00> : vector<128xf32>
    %14 = vector.multi_reduction <add>, %13, %cst_10 [1] : vector<128x128xf32> to vector<128xf32>
    %15 = vector.shape_cast %14 : vector<128xf32> to vector<128x1xf32>
    %cst_11 = arith.constant 1.000000e-16 : f32
    %16 = vector.broadcast %cst_11 : f32 to vector<128x1xf32>
    %17 = arith.maximumf %15, %16 : vector<128x1xf32>
    %18 = math.rsqrt %17 : vector<128x1xf32>
    %19 = vector.broadcast %18 : vector<128x1xf32> to vector<128x128xf32>
    %20 = arith.mulf %12, %19 : vector<128x128xf32>
    %c0_12 = arith.constant 0 : index
    %c0_13 = arith.constant 0 : index
    %21 = vector.load %arg6[%c0_12, %c0_13] : memref<128x128xf32, #tpu.memory_space<vmem>>, vector<128x128xf32>
    %cst_14 = arith.constant dense<0.000000e+00> : vector<128x128xf32>
    %22 = tpu.matmul %20, %20, %cst_14 {dimension_numbers = #tpu.dot_dimension_numbers<[1], [1], [0], [0], [0, 0, 1, 0], [], []>, precision = #tpu.contract_precision<fp32>} : vector<128x128xf32>, vector<128x128xf32>, vector<128x128xf32> -> vector<128x128xf32>
    %23 = arith.mulf %22, %21 : vector<128x128xf32>
    %24 = vector.shape_cast %23 : vector<128x128xf32> to vector<16x8x128xf32>
    %cst_15 = arith.constant dense<0.000000e+00> : vector<8x128xf32>
    %25 = vector.multi_reduction <add>, %24, %cst_15 [0] : vector<16x8x128xf32> to vector<8x128xf32>
    %c0_16 = arith.constant 0 : index
    %c0_17 = arith.constant 0 : index
    %26 = vector.load %arg7[%c0_16, %c0_17] : memref<8x128xf32, #tpu.memory_space<vmem>>, vector<8x128xf32>
    %cst_18 = arith.constant 8.000000e-01 : f32
    %27 = vector.broadcast %cst_18 : f32 to vector<8x128xf32>
    %28 = arith.cmpf ogt, %25, %27 : vector<8x128xf32>
    %cst_19 = arith.constant 1.000000e+00 : f32
    %29 = vector.broadcast %cst_19 : f32 to vector<8x128xf32>
    %30 = arith.select %28, %29, %26 : vector<8x128xi1>, vector<8x128xf32>
    %cst_20 = arith.constant 2.000000e-01 : f32
    %31 = vector.broadcast %cst_20 : f32 to vector<8x128xf32>
    %32 = arith.cmpf olt, %25, %31 : vector<8x128xf32>
    %cst_21 = arith.constant 0.000000e+00 : f32
    %33 = vector.broadcast %cst_21 : f32 to vector<8x128xf32>
    %34 = arith.select %32, %33, %30 : vector<8x128xi1>, vector<8x128xf32>
    %c0_22 = arith.constant 0 : index
    %c0_23 = arith.constant 0 : index
    %35 = vector.load %arg8[%c0_22, %c0_23] : memref<8x128xf32, #tpu.memory_space<vmem>>, vector<8x128xf32>
    tpu.vector_store %arg8[%c0_22, %c0_23], %34 {strides = array<i32>} : memref<8x128xf32, #tpu.memory_space<vmem>>, vector<8x128xf32>,
    return
  }
  func.func @transform_0(%arg0: i32) -> (i32, i32) {
    %c0_i32 = arith.constant 0 : i32
    %c0_i32_0 = arith.constant 0 : i32
    return %arg0, %c0_i32 : i32, i32
  }
  func.func @transform_1(%arg0: i32) -> (i32, i32) {
    %c0_i32 = arith.constant 0 : i32
    %c0_i32_0 = arith.constant 0 : i32
    %c0_i32_1 = arith.constant 0 : i32
    return %c0_i32, %c0_i32_0 : i32, i32
  }
  func.func @transform_2(%arg0: i32) -> (i32, i32) {
    %c0_i32 = arith.constant 0 : i32
    %c0_i32_0 = arith.constant 0 : i32
    %c0_i32_1 = arith.constant 0 : i32
    return %c0_i32, %c0_i32_0 : i32, i32
  }
  func.func @transform_3(%arg0: i32) -> (i32, i32) {
    %c0_i32 = arith.constant 0 : i32
    %c0_i32_0 = arith.constant 0 : i32
    %c0_i32_1 = arith.constant 0 : i32
    return %c0_i32, %c0_i32_0 : i32, i32
  }
  func.func @transform_4(%arg0: i32) -> (i32, i32) {
    %c0_i32 = arith.constant 0 : i32
    %c0_i32_0 = arith.constant 0 : i32
    %c0_i32_1 = arith.constant 0 : i32
    return %c0_i32, %c0_i32_0 : i32, i32
  }
  func.func @transform_5(%arg0: i32) -> (i32, i32) {
    %c0_i32 = arith.constant 0 : i32
    %c0_i32_0 = arith.constant 0 : i32
    %c0_i32_1 = arith.constant 0 : i32
    return %c0_i32, %c0_i32_0 : i32, i32
  }
  func.func @transform_6(%arg0: i32) -> (i32, i32) {
    %c0_i32 = arith.constant 0 : i32
    %c0_i32_0 = arith.constant 0 : i32
    return %c0_i32, %arg0 : i32, i32
  }
  func.func @transform_7(%arg0: i32) -> (i32, i32) {
    %c0_i32 = arith.constant 0 : i32
    %c0_i32_0 = arith.constant 0 : i32
    return %c0_i32, %arg0 : i32, i32
  }
}

</mosaic_0001>

<bundles_post_ra>
// kernel: tpu_custom_call.1
= control target key start
LH: loop header
LB: loop body
LE: loop exit
PB: predicated region body
PF: predicated region fallthrough
CT: control target
= control target key end

     0   :  { %12 = vsyncpa [#allocation3], 0  ;;  %s9330_s0 = inlined_call_operand.hbm [shape: f32[256,128], index: 0, kind: input, shape index: {}]   ;;  %s9331_s1 = inlined_call_operand.hbm [shape: f32[128,128], index: 1, kind: input, shape index: {}]   ;;  %s9332_s2 = inlined_call_operand.vmem [shape: f32[1,128], index: 2, kind: input, shape index: {}]   ;;  %s9333_s3 = inlined_call_operand.hbm [shape: f32[128,128], index: 3, kind: input, shape index: {}]   ;;  %s9334_s4 = inlined_call_operand.vmem [shape: f32[1,128], index: 4, kind: input, shape index: {}]   ;;  %s9335_s5 = inlined_call_operand.hbm [shape: f32[128,128], index: 5, kind: input, shape index: {}]   ;;  %s9336_s6 = inlined_call_operand.vmem [shape: f32[8,256], index: 6, kind: input, shape index: {}]   ;;  %s9337_s7 = inlined_call_operand.hbm [shape: f32[8,256], index: 7, kind: output, shape index: {}]  }
   0x1   :  { %14 = vsyncpa [#allocation3 + $0x1], 0 }
   0x2   :  { %15 = vsyncpa [#allocation6], 0 }
   0x3   :  { %16 = vsyncpa [#allocation9], 0 }
   0x4   :  { %17 = vsyncpa [#allocation4], 0 }
   0x5   :  { %19 = vsyncpa [#allocation4 + $0x1], 0  ;;  %s7452_s24 = smov 0   ;;  %s7454_s25 = smov 0  }
   0x6   :  { %s7456_s26 = smov 0   ;;  %s7458_s27 = smov 0  }
   0x7 LB: > { %s7473_s28 = sadd.s32 4294967295, %s7403_s27   ;;  %s4585_s29 = sadd.s32 4294967294, %s7403_s27   ;;  %s7403_s27 = sphi %s7458_s27, %s9612_s27   ;;  %s7399_s26 = sphi %s7456_s26, %s9611_s26   ;;  %s7395_s25 = sphi %s7454_s25, %s9610_s25   ;;  %s7391_s24 = sphi %s7452_s24, %s9609_s24  }
   0x8   : > { %p45_p0 = scmp.ne.s32.totalorder %s7395_s25, %s7391_s24  ;;  %p9338_p1 = scmp.eq.s32.totalorder %s7473_s28, 0 }
   0x9   : > { %p206_p3 = scmp.eq.s32.totalorder %s4585_s29, 1  ;;  %p4586_p5 = scmp.ge.s32.totalorder %s7403_s27, 1 }
   0xa   : > { %p7482_p4 = por %p9338_p1, %p45_p0  ;;  %p213_p7 = scmp.lt.s32.totalorder %s7403_s27, 3 }
   0xb   : > { %p7487_p6 = por %p206_p3, %p45_p0  ;;  %s7405_s10 = smov [#allocation5]  }
   0xc   : > { %s9447_s30 = scalar_select %p7482_p4, 1, 0 }
   0xd   : > { %s9448_s8 = scalar_select %p7487_p6, 1, 0 }
   0xe   : > { %p7492_p8 = pnand %p4586_p5, %p213_p7  ;;  %s225_s11 = sshll.u32 %s7405_s10, 4  ;;  %s7496_s11 = int_to_ptr.vmem [resolvable:$true] %s225_s11 }
   0xf   : > { %9449 = sst [smem:[#allocation15_spill]] %s9448_s8  ;;  %s7406_s13 = smov [#allocation7]  }
  0x10   : > { %s9450_s9 = scalar_select %p7492_p8, 1, 0 }
  0x11   : > { %p7056_p9 = pneg %p7492_p8  ;;  %s241_s14 = sshll.u32 %s7406_s13, 4  ;;  %s7507_s14 = int_to_ptr.vmem [resolvable:$true] %s241_s14 }
  0x12   : > { %s7407_s15 = smov [#allocation8]   ;;  %s7215_s19 = scalar_lea.hbm %s9331_s1, 2048 }
  0x13   : > { %p7503_p11 = pnand %p7056_p9, %p9338_p1  ;;  %s7509_s16 = sshll.u32 %s7407_s15, 4  ;;  %s258_s16 = int_to_ptr.vmem [resolvable:$true] %s7509_s16 }
  0x14   : > { %p7216_p12 = scmp.ne.s32.totalorder %s9331_s1, %s7215_s19  ;;  %p7222_p5 = scmp.lt.u32.totalorder %s7215_s19, %s9331_s1 }
  0x15   : > { %p7519_p13 = pneg %p7503_p11 }
  0x17   : > { %p7218_p0 = pnand %p7519_p13, %p7216_p12 }
  0x19   : > { %p7219_p3 = pneg %p7218_p0 }
  0x1b   : > { %p7224_p7 = pnand %p7222_p5, %p7219_p3 }
  0x1d   : > { %7227 = shalt.err (!%p7224_p7)
}
  0x1e   : > { %s7228_s10 = scalar_lea.vmem %s7496_s11, 2048  ;;  %p7236_p2 = scmp.lt.s32.totalorder %s7496_s11, %s7496_s11 }
  0x1f   : > { %p7229_p9 = scmp.ne.s32.totalorder %s7496_s11, %s7228_s10  ;;  %p7237_p6 = scmp.lt.s32.totalorder %s7228_s10, %s7228_s10 }
  0x21   : > { %p7231_p10 = pnand %p7229_p9, %p7519_p13  ;;  %p7238_p12 = por %p7237_p6, %p7236_p2 }
  0x23   : > { %p7232_p1 = pneg %p7231_p10 }
  0x25   : > { %p7239_p0 = pnand %p7238_p12, %p7232_p1 }
  0x27   : > { %7242 = shalt.err (!%p7239_p0)
}
  0x28   : > { %s7408_s13 = smov 128   ;;  %s7409_s15 = smov 8  }
  0x29   : > { %7059 = dma.hbm_to_vmem [thread:$0]  (!%p7503_p11), %s9331_s1, 2048, %s7496_s11, [#allocation6], %s7408_s13, %s7408_s13, %s7409_s15  }
  0x2a   : > { %s7243_s21 = scalar_lea.hbm %s9333_s3, 2048 }
  0x2b   : > { %p7244_p1 = scmp.ne.s32.totalorder %s9333_s3, %s7243_s21  ;;  %p7250_p10 = scmp.lt.u32.totalorder %s7243_s21, %s9333_s3 }
  0x2d   : > { %p7246_p2 = pnand %p7244_p1, %p7519_p13 }
  0x2f   : > { %p7247_p6 = pneg %p7246_p2 }
  0x31   : > { %p7252_p3 = pnand %p7250_p10, %p7247_p6 }
  0x33   : > { %7255 = shalt.err (!%p7252_p3)
}
  0x34   : > { %s7256_s11 = scalar_lea.vmem %s7507_s14, 2048  ;;  %p7264_p12 = scmp.lt.s32.totalorder %s7507_s14, %s7507_s14 }
  0x35   : > { %p7257_p5 = scmp.ne.s32.totalorder %s7507_s14, %s7256_s11  ;;  %p7265_p0 = scmp.lt.s32.totalorder %s7256_s11, %s7256_s11 }
  0x37   : > { %p7259_p7 = pnand %p7257_p5, %p7519_p13  ;;  %p7266_p1 = por %p7265_p0, %p7264_p12 }
  0x39   : > { %p7260_p9 = pneg %p7259_p7 }
  0x3b   : > { %p7267_p2 = pnand %p7266_p1, %p7260_p9 }
  0x3d   : > { %7270 = shalt.err (!%p7267_p2)
}
  0x3e   : > { %7062 = dma.hbm_to_vmem [thread:$0]  (!%p7503_p11), %s9333_s3, 2048, %s7507_s14, [#allocation6], %s7408_s13, %s7408_s13, %s7409_s15  }
  0x3f   : > { %s7271_s20 = scalar_lea.hbm %s9335_s5, 2048 }
  0x40   : > { %p7272_p6 = scmp.ne.s32.totalorder %s9335_s5, %s7271_s20  ;;  %p7278_p5 = scmp.lt.u32.totalorder %s7271_s20, %s9335_s5 }
  0x42   : > { %p7274_p10 = pnand %p7272_p6, %p7519_p13 }
  0x44   : > { %p7275_p3 = pneg %p7274_p10 }
  0x46   : > { %p7280_p7 = pnand %p7278_p5, %p7275_p3 }
  0x48   : > { %7283 = shalt.err (!%p7280_p7)
}
  0x49   : > { %s7284_s11 = scalar_lea.vmem %s258_s16, 2048  ;;  %p7292_p1 = scmp.lt.s32.totalorder %s258_s16, %s258_s16 }
  0x4a   : > { %p7285_p9 = scmp.ne.s32.totalorder %s258_s16, %s7284_s11  ;;  %p7293_p2 = scmp.lt.s32.totalorder %s7284_s11, %s7284_s11 }
  0x4c   : > { %p7287_p12 = pnand %p7285_p9, %p7519_p13  ;;  %p7294_p4 = por %p7293_p2, %p7292_p1 }
  0x4e   : > { %p7288_p0 = pneg %p7287_p12 }
  0x50   : > { %p7295_p8 = pnand %p7294_p4, %p7288_p0 }
  0x52   : > { %7298 = shalt.err (!%p7295_p8)
}
  0x53   : > { %7065 = dma.hbm_to_vmem [thread:$0]  (!%p7503_p11), %s9335_s5, 2048, %s258_s16, [#allocation9], %s7408_s13, %s7408_s13, %s7409_s15  }
  0x54   : > { %s7592_s22 = sadd.s32 1, %s7403_s27   ;;  %s32_s17 = sadd.s32 1, %s7399_s26 }
  0x55   : > { %s29_s12 = ssub.s32 %s7403_s27, %s7592_s22  ;;  %p39_p8 = scmp.ne.s32.totalorder %s7399_s26, %s7395_s25 }
  0x56   : > { %p30_p4 = scmp.eq.s32.totalorder %s29_s12, 0  ;;  %p40_p13 = scmp.eq.s32.totalorder %s7403_s27, 0 }
  0x57   : > { %p7077_p6 = scmp.lt.s32.totalorder %s7403_s27, 2  ;;  %p9453_p3 = scmp.eq.s32.totalorder %s7473_s28, 1 }
  0x58   : > { %s7602_s18 = scalar_select %p30_p4, %s7399_s26, %s32_s17  }
  0x59   : > { %p41_p10 = por %p40_p13, %p39_p8  ;;  %p7606_p5 = por %p9453_p3, %p39_p8 }
  0x5a   : > { %s271_s20 = sand.u32 1, %s7399_s26   ;;  %s4607_s21 = sshll.u32 %s7403_s27, 11 }
  0x5b   : > { %s4591_s16 = sshll.u32 %s271_s20, 7  ;;  %s7615_s10 = scalar_lea.hbm %s9330_s0, %s4607_s21 }
  0x5c   : > { %s275_s11 = scalar_lea.vmem [#allocation2], %s4591_s16  ;;  %p7617_p11 = pnand %p7077_p6, %p41_p10 }
  0x5d   : > { %s282_s14 = sshll.u32 %s275_s11, 4  ;;  %s7623_s12 = scalar_lea.sflag [#allocation3], %s271_s20  ;;  %s7621_s14 = int_to_ptr.vmem [resolvable:$true] %s282_s14 }
  0x5e   : > { %s7299_s17 = scalar_lea.hbm %s7615_s10, 2048  ;;  %p7301_p9 = pneg %p7617_p11 }
  0x5f   : > { %p7300_p7 = scmp.ne.s32.totalorder %s7615_s10, %s7299_s17  ;;  %s7304_s23 = scalar_lea.hbm %s9330_s0, 4096 }
  0x60   : > { %p7305_p1 = scmp.lt.u32.totalorder %s7615_s10, %s9330_s0  ;;  %p7306_p2 = scmp.lt.u32.totalorder %s7304_s23, %s7299_s17 }
  0x61   : > { %p7302_p12 = pnand %p7301_p9, %p7300_p7  ;;  %p7308_p8 = scmp.lt.u32.totalorder %s7299_s17, %s7615_s10 }
  0x62   : > { %p7307_p4 = por %p7306_p2, %p7305_p1 }
  0x63   : > { %p7303_p0 = pneg %p7302_p12 }
  0x64   : > { %p7309_p13 = por %p7308_p8, %p7307_p4 }
  0x66   : > { %p7310_p6 = pnand %p7309_p13, %p7303_p0 }
  0x68   : > { %7313 = shalt.err (!%p7310_p6)
}
  0x69   : > { %s7314_s20 = scalar_lea.vmem %s7621_s14, 2048  ;;  %s7410_s21 = smov [#allocation2]  }
  0x6a   : > { %p7315_p10 = scmp.ne.s32.totalorder %s7621_s14, %s7314_s20  ;;  %s7319_s16 = sshll.u32 %s7410_s21, 4  ;;  %s7320_s16 = int_to_ptr.vmem [resolvable:$false] %s7319_s16 }
  0x6b   : > { %s7321_s29 = scalar_lea.vmem %s7320_s16, 4096  ;;  %p7322_p12 = scmp.lt.s32.totalorder %s7621_s14, %s7320_s16 }
  0x6c   : > { %p7317_p3 = pnand %p7315_p10, %p7301_p9  ;;  %p7323_p1 = scmp.lt.s32.totalorder %s7321_s29, %s7314_s20 }
  0x6e   : > { %p7318_p7 = pneg %p7317_p3  ;;  %p7324_p2 = por %p7323_p1, %p7322_p12 }
  0x70   : > { %p7325_p4 = pnand %p7324_p2, %p7318_p7 }
  0x72   : > { %7328 = shalt.err (!%p7325_p4)
}
  0x73   : > { %7069 = dma.hbm_to_vmem [thread:$0]  (!%p7617_p11), %s7615_s10, 2048, %s7621_s14, %s7623_s12, %s7408_s13, %s7408_s13, %s7409_s15  }
  0x74   : > { %p9456_p9 = scmp.ne.s32.totalorder %s9450_s9, 0 }
  0x76   : > { %301 = sbr.rel (%p9456_p9) target bundleno = 1584 (0x630), region = 48 }
  0x7d   : > { %s7657_s17 = sand.u32 1, %s7395_s25   ;;  %p9457_p0 = scmp.ne.s32.totalorder %s9447_s30, 0 }
  0x7e   : > { %s4595_s23 = sshll.u32 %s7657_s17, 7  ;;  %s304_s11 = scalar_lea.sflag [#allocation3], %s7657_s17 }
  0x7f   : > { %s7661_s20 = scalar_lea.vmem [#allocation2], %s4595_s23 }
  0x80   : > { %7374 = dma.done.wait (%p9457_p0), %s304_s11, 2048  }
  0x81   : > { %7376 = vsyncadd (%p9457_p0), %s304_s11, 4294965248  ;;  %p9458_p11 = scmp.eq.s32.totalorder %s7473_s28, 0 }
  0x83   : > { %7378 = dma.done.wait (%p9458_p11), [#allocation6], 4096   ;;  %p9459_p8 = pmov %p9458_p11 }
  0x85   : > { %7380 = vsyncadd (%p9459_p8), [#allocation6], 4294963200  ;;  %p9460_p13 = pmov %p9459_p8 }
  0x86   : > { %p9461_p6 = pmov %p9459_p8 }
  0x87   : > { %7382 = dma.done.wait (%p9460_p13), [#allocation9], 2048  }
  0x88   : > { %7384 = vsyncadd (%p9461_p6), [#allocation9], 4294965248  ;;  %v375_v0 = vld [vmem:[#allocation5] sm:$0xff]  ;;  %v376_v1 = vld [vmem:[#allocation5 + $0x8] sm:$0xff]  ;;  %p355_p10 = scmp.lt.s32.totalorder %s7473_s28, 1  ;;  %s4599_s14 = sshll.u32 %s7657_s17, 3 }
  0x89   : > { %v377_v2 = vld [vmem:[#allocation5 + $0x10] sm:$0xff]  ;;  %v399_v3 = vand.u32 4294901760, %v375_v0  ;;  %v402_v4 = vand.u32 4294901760, %v376_v1  ;;  %v378_v5 = vld [vmem:[#allocation5 + $0x18] sm:$0xff]  ;;  %v7675_v7 = vld [vmem:[#allocation5 + $0x20] sm:$0xff]  ;;  %s4604_s29 = sshll.u32 %s7473_s28, 7 }
  0x8a   : > { %v405_v6 = vand.u32 4294901760, %v377_v2  ;;  %v7677_v8 = vld [vmem:[#allocation5 + $0x28] sm:$0xff]  ;;  %v408_v9 = vand.u32 4294901760, %v378_v5  ;;  %v411_v11 = vand.u32 4294901760, %v7675_v7  ;;  %v7685_v14 = vld [vmem:[#allocation5 + $0x30] sm:$0xff]  ;;  %v7687_v15 = vld [vmem:[#allocation5 + $0x38] sm:$0xff]  ;;  %s9286_s9 = scalar_lea.hbm %s9337_s7, %s4604_s29 }
  0x8b   : > { %v7679_v10 = vpack.c.bf16 %v402_v4, %v399_v3  ;;  %v414_v12 = vand.u32 4294901760, %v7677_v8  ;;  %v359_v16 = vld [vmem:[%s7661_s20] sm:$0xff]  ;;  %v360_v17 = vld [vmem:[%s7661_s20 + $0x8] sm:$0xff]  ;;  %v417_v20 = vand.u32 4294901760, %v7685_v14  ;;  %v420_v21 = vand.u32 4294901760, %v7687_v15  ;;  %v361_v26 = vld [vmem:[%s7661_s20 + $0x10] sm:$0xff] }
  0x8c   : > { %v7683_v13 = vpack.c.bf16 %v408_v9, %v405_v6  ;;  %v7693_v18 = vand.u32 4294901760, %v359_v16  ;;  %v7704_v22 = vld [vmem:[#allocation5 + $0x40] sm:$0xff]  ;;  %v7706_v23 = vld [vmem:[#allocation5 + $0x48] sm:$0xff]  ;;  %v7711_v25 = vand.u32 4294901760, %v360_v17  ;;  %v362_v27 = vld [vmem:[%s7661_s20 + $0x18] sm:$0xff]  ;;  %v7728_v33 = vsub.f32 %v375_v0, %v399_v3  ;;  %s356_s10 = scalar_select %p355_p10, %s7473_s28, 1 }
  0x8d   : > { %9462 = vst [vmem:[#allocation16_spill] sm:$0xff] %v7679_v10  ;;  %6193 = vmatprep.subr.bf16.mxu0 %v7679_v10  ;;  %v7700_v19 = vpack.c.bf16 %v414_v12, %v411_v11  ;;  %v423_v28 = vand.u32 4294901760, %v7704_v22  ;;  %v7723_v30 = vpack.c.bf16 %v420_v21, %v417_v20  ;;  %v426_v31 = vand.u32 4294901760, %v7706_v23  ;;  %v7726_v32 = vld [vmem:[#allocation5 + $0x50] sm:$0xff]  ;;  %v7732_v35 = vld [vmem:[#allocation5 + $0x58] sm:$0xff]  ;;  %v7748_v42 = vld [vmem:[#allocation5 + $0x60] sm:$0xff] }
  0x8e   : > { %9463 = vst [vmem:[#allocation17_spill] sm:$0xff] %v7683_v13  ;;  %6195 = vmatpush3.bf16.msra.mxu0 %v7679_v10  ;;  %v7709_v24 = vsub.f32 %v359_v16, %v7693_v18  ;;  %v7730_v34 = vsub.f32 %v376_v1, %v402_v4  ;;  %v7738_v37 = vsub.f32 %v360_v17, %v7711_v25  ;;  %v7740_v38 = vand.u32 4294901760, %v361_v26  ;;  %v7750_v43 = vld [vmem:[#allocation5 + $0x68] sm:$0xff]  ;;  %v7760_v47 = vld [vmem:[#allocation5 + $0x70] sm:$0xff]  ;;  %v363_v50 = vld [vmem:[%s7661_s20 + $0x20] sm:$0xff]  ;;  %s4600_s8 = sshll.u32 %s356_s10, 3 }
  0x8f   : > { %6197 = vmatprep.subr.bf16.mxu0 %v7683_v13  ;;  %9464 = vst [vmem:[#allocation18_spill] sm:$0xff] %v7700_v19  ;;  %9466 = vst [vmem:[#allocation20_spill] sm:$0xff] %v7723_v30  ;;  %v7742_v39 = vand.u32 4294901760, %v362_v27  ;;  %v7744_v40 = vsub.f32 %v377_v2, %v405_v6  ;;  %v9355_v41 = vand.u32 4294901760, %v7726_v32  ;;  %v7757_v45 = vpack.c.bf16 %v426_v31, %v423_v28  ;;  %v364_v51 = vld [vmem:[%s7661_s20 + $0x28] sm:$0xff]  ;;  %v7767_v52 = vld [vmem:[#allocation5 + $0x78] sm:$0xff]  ;;  %s358_s16 = scalar_lea.vmem %s9336_s6, %s4600_s8 }
  0x90   : > { %9465 = vst [vmem:[#allocation19_spill] sm:$0xff] %v7709_v24  ;;  %v9343_v29 = vand.u32 4294901760, %v7709_v24  ;;  %9467 = vst [vmem:[#allocation21_spill] sm:$0xff] %v7738_v37  ;;  %v9354_v46 = vand.u32 4294901760, %v7732_v35  ;;  %v9346_v48 = vand.u32 4294901760, %v7728_v33  ;;  %v7763_v49 = vsub.f32 %v378_v5, %v408_v9  ;;  %v365_v3 = vld [vmem:[%s7661_s20 + $0x30] sm:$0xff] }
  0x91   : > { %9468 = vst [vmem:[#allocation22_spill] sm:$0xff] %v7757_v45  ;;  %v9342_v53 = vand.u32 4294901760, %v7738_v37  ;;  %v9345_v54 = vand.u32 4294901760, %v7730_v34  ;;  %v7772_v55 = vsub.f32 %v361_v26, %v7740_v38  ;;  %v7775_v56 = vsub.f32 %v362_v27, %v7742_v39  ;;  %s353_s23 = scalar_lea.vmem [#allocation10], %s4599_s14  ;;  %s4461_s13 = scalar_lea.sflag [#allocation4], %s7657_s17 }
  0x92   : > { %6199 = vmatpush3.bf16.msra.mxu0 %v7683_v13  ;;  %v482_v36 = vsub.f32 %v7709_v24, %v9343_v29  ;;  %v9353_v57 = vand.u32 4294901760, %v7748_v42  ;;  %v9344_v58 = vand.u32 4294901760, %v7744_v40  ;;  %v9352_v59 = vand.u32 4294901760, %v7750_v43  ;;  %s4474_s11 = sshll.u32 %s353_s23, 4  ;;  %s7411_s28 = smov [#allocation10]   ;;  %s9288_s11 = int_to_ptr.vmem [resolvable:$true] %s4474_s11 }
  0x93   : > { %6201 = vmatprep.subr.bf16.mxu0 %v7700_v19  ;;  %9469 = vst [vmem:[#allocation23_spill] sm:$0xff] %v7772_v55  ;;  %9470 = vst [vmem:[#allocation24_spill] sm:$0xff] %v7775_v56  ;;  %v9349_v60 = vand.u32 4294901760, %v7760_v47  ;;  %v7782_v61 = vand.u32 4294901760, %v363_v50  ;;  %v7784_v62 = vand.u32 4294901760, %v364_v51  ;;  %v7791_v63 = vpack.c.bf16 %v9354_v46, %v9355_v41  ;;  %s7329_s15 = scalar_lea.vmem %s9288_s11, 128 }
  0x94   : > { %v483_v44 = vand.u32 4294901760, %v482_v36  ;;  %v9347_v0 = vand.u32 4294901760, %v7767_v52  ;;  %v643_v1 = vsub.f32 %v7728_v33, %v9346_v48  ;;  %v9348_v2 = vand.u32 4294901760, %v7763_v49  ;;  %v368_v48 = vld [vmem:[%s7661_s20 + $0x48] sm:$0xff]  ;;  %p7330_p3 = scmp.ne.s32.totalorder %s9288_s11, %s7329_s15  ;;  %s7333_s10 = sshll.u32 %s7411_s28, 4  ;;  %s7334_s10 = int_to_ptr.vmem [resolvable:$false] %s7333_s10 }
  0x95   : > { %9471 = vst [vmem:[#allocation25_spill] sm:$0xff] %v7791_v63  ;;  %v7802_v4 = vsub.f32 %v7738_v37, %v9342_v53  ;;  %v650_v5 = vsub.f32 %v7730_v34, %v9345_v54  ;;  %v9350_v6 = vand.u32 4294901760, %v7772_v55  ;;  %v9351_v9 = vand.u32 4294901760, %v7775_v56  ;;  %v366_v53 = vld [vmem:[%s7661_s20 + $0x38] sm:$0xff]  ;;  %v367_v54 = vld [vmem:[%s7661_s20 + $0x40] sm:$0xff]  ;;  %s7335_s14 = scalar_lea.vmem %s7334_s10, 256  ;;  %p7336_p1 = scmp.lt.s32.totalorder %s9288_s11, %s7334_s10 }
  0x96   : > { %6203 = vmatpush3.bf16.msra.mxu0 %v7700_v19  ;;  %5216 = vmatprep.mubr.f32.mxu0 %v483_v44  ;;  %v657_v16 = vsub.f32 %v7744_v40, %v9344_v58  ;;  %v7815_v17 = vsub.f32 %v7675_v7, %v411_v11  ;;  %v7820_v26 = vsub.f32 %v7677_v8, %v414_v12  ;;  %v7829_v44 = vand.u32 4294901760, %v365_v3  ;;  %p7331_p7 = pnand %p7330_p3, %p7606_p5  ;;  %p7337_p2 = scmp.lt.s32.totalorder %s7335_s14, %s7329_s15 }
  0x97   : > { %6205 = vmatprep.subr.bf16.mxu0 %v7723_v30  ;;  %v7824_v27 = vsub.f32 %v363_v50, %v7782_v61  ;;  %v7827_v36 = vsub.f32 %v364_v51, %v7784_v62  ;;  %v7837_v7 = vpack.c.bf16 %v9352_v59, %v9353_v57  ;;  %v7843_v8 = vpack.c.bf16 %v9347_v0, %v9349_v60 }
  0x98   : > { %v644_v11 = vand.u32 4294901760, %v643_v1  ;;  %v664_v12 = vsub.f32 %v7763_v49, %v9348_v2  ;;  %v493_v50 = vand.u32 4294901760, %v7802_v4  ;;  %v651_v51 = vand.u32 4294901760, %v650_v5  ;;  %p7332_p12 = pneg %p7331_p7  ;;  %p7338_p4 = por %p7337_p2, %p7336_p1 }
  0x99   : > { %9472 = vst [vmem:[#allocation26_spill] sm:$0xff] %v7824_v27  ;;  %9473 = vst [vmem:[#allocation27_spill] sm:$0xff] %v7827_v36  ;;  %v7852_v29 = vsub.f32 %v7772_v55, %v9350_v6  ;;  %v7857_v58 = vsub.f32 %v7775_v56, %v9351_v9  ;;  %v658_v1 = vand.u32 4294901760, %v657_v16  ;;  %v9359_v0 = vand.u32 4294901760, %v7815_v17 }
  0x9a   : > { %6207 = vmatpush3.bf16.msra.mxu0 %v7723_v30  ;;  %9474 = vst [vmem:[#allocation28_spill] sm:$0xff] %v7837_v7  ;;  %9475 = vst [vmem:[#allocation29_spill] sm:$0xff] %v7843_v8  ;;  %v9357_v2 = vand.u32 4294901760, %v7820_v26  ;;  %v7863_v60 = vand.u32 4294901760, %v366_v53  ;;  %v9356_v4 = vand.u32 4294901760, %v7824_v27  ;;  %v9358_v5 = vand.u32 4294901760, %v7827_v36  ;;  %p7339_p9 = pnand %p7338_p4, %p7332_p12 }
  0x9b   : > { %6209 = vmatprep.subr.bf16.mxu0 %v7757_v45  ;;  %v7869_v6 = vsub.f32 %v365_v3, %v7829_v44  ;;  %v7874_v16 = vsub.f32 %v7685_v14, %v417_v20  ;;  %v665_v9 = vand.u32 4294901760, %v664_v12  ;;  %v7880_v59 = vsub.f32 %v7687_v15, %v420_v21 }
  0x9c   : > { %v7882_v57 = vand.u32 4294901760, %v367_v54  ;;  %v7884_v46 = vand.u32 4294901760, %v368_v48  ;;  %v6224_v41 = vpack.c.bf16 %v651_v51, %v644_v11  ;;  %v503_v3 = vand.u32 4294901760, %v7852_v29 }
  0x9d   : > { %9476 = vst [vmem:[#allocation30_spill] sm:$0xff] %v7869_v6  ;;  %v7890_v14 = vsub.f32 %v7704_v22, %v423_v28  ;;  %v7895_v20 = vsub.f32 %v7706_v23, %v426_v31  ;;  %v513_v15 = vand.u32 4294901760, %v7857_v58  ;;  %v671_v21 = vsub.f32 %v7815_v17, %v9359_v0  ;;  %v369_v22 = vld [vmem:[%s7661_s20 + $0x50] sm:$0xff]  ;;  %v370_v31 = vld [vmem:[%s7661_s20 + $0x58] sm:$0xff] }
  0x9e   : > { %6211 = vmatpush3.bf16.msra.mxu0 %v7757_v45  ;;  %v678_v29 = vsub.f32 %v7820_v26, %v9357_v2  ;;  %v7905_v11 = vsub.f32 %v366_v53, %v7863_v60  ;;  %v522_v23 = vsub.f32 %v7824_v27, %v9356_v4  ;;  %v7915_v28 = vsub.f32 %v7827_v36, %v9358_v5  ;;  %v372_v27 = vld [vmem:[%s7661_s20 + $0x68] sm:$0xff] }
  0x9f   : > { %6213 = vmatprep.subr.bf16.mxu0 %v7791_v63  ;;  %v6228_v53 = vpack.c.bf16 %v665_v9, %v658_v1  ;;  %v7922_v51 = vsub.f32 %v367_v54, %v7882_v57  ;;  %v7925_v4 = vsub.f32 %v368_v48, %v7884_v46  ;;  %v7929_v0 = vand.u32 4294901760, %v369_v22 }
  0xa0   : > { %9477 = vst [vmem:[#allocation31_spill] sm:$0xff] %v7905_v11  ;;  %v9480_v58 = vand.u32 4294901760, %v7726_v32  ;;  %v672_v1 = vand.u32 4294901760, %v671_v21  ;;  %v679_v12 = vand.u32 4294901760, %v678_v29  ;;  %v523_v5 = vand.u32 4294901760, %v522_v23  ;;  %v371_v29 = vld [vmem:[%s7661_s20 + $0x60] sm:$0xff] }
  0xa1   : > { %9478 = vst [vmem:[#allocation32_spill] sm:$0xff] %v7922_v51  ;;  %9479 = vst [vmem:[#allocation33_spill] sm:$0xff] %v7925_v4  ;;  %v533_v2 = vand.u32 4294901760, %v7915_v28  ;;  %v7957_v28 = vand.u32 4294901760, %v370_v31  ;;  %v9485_v54 = vand.u32 4294901760, %v7890_v14  ;;  %v7966_v30 = vsub.f32 %v369_v22, %v7929_v0 }
  0xa2   : > { %6215 = vmatpush3.bf16.msra.mxu0 %v7791_v63  ;;  %v7935_v9 = vsub.f32 %v7726_v32, %v9480_v58  ;;  %v9482_v63 = vand.u32 4294901760, %v7869_v6  ;;  %v9483_v32 = vand.u32 4294901760, %v7874_v16  ;;  %v9484_v58 = vand.u32 4294901760, %v7880_v59 }
  0xa3   : > { %6217 = vmatprep.subr.bf16.mxu0 %v7837_v7  ;;  %9487 = vst [vmem:[#allocation34_spill] sm:$0xff] %v7966_v30  ;;  %v7973_v19 = vand.u32 4294901760, %v371_v29  ;;  %v9489_v22 = vand.u32 4294901760, %v7748_v42  ;;  %v9496_v37 = vand.u32 4294901760, %v7966_v30 }
  0xa4   : > { %v542_v45 = vsub.f32 %v7869_v6, %v9482_v63  ;;  %v685_v21 = vsub.f32 %v7874_v16, %v9483_v32  ;;  %v699_v63 = vsub.f32 %v7890_v14, %v9485_v54  ;;  %v9488_v6 = vand.u32 4294901760, %v7905_v11 }
  0xa5   : > { %v582_v10 = vsub.f32 %v7966_v30, %v9496_v37  ;;  %v9506_v30 = vand.u32 4294901760, %v7874_v16 }
  0xa6   : > { %6219 = vmatpush3.bf16.msra.mxu0 %v7837_v7  ;;  %v9481_v7 = vand.u32 4294901760, %v7732_v35  ;;  %v552_v23 = vsub.f32 %v7905_v11, %v9488_v6  ;;  %v543_v54 = vand.u32 4294901760, %v542_v45  ;;  %v9492_v45 = vand.u32 4294901760, %v7925_v4 }
  0xa7   : > { %6221 = vmatprep.subr.bf16.mxu0 %v7843_v8 }
  0xa8   : > { %v7941_v48 = vsub.f32 %v7732_v35, %v9481_v7  ;;  %v692_v35 = vsub.f32 %v7880_v59, %v9484_v58  ;;  %v6232_v7 = vpack.c.bf16 %v679_v12, %v672_v1  ;;  %v7979_v58 = vsub.f32 %v7748_v42, %v9489_v22  ;;  %v373_v42 = vld [vmem:[%s7661_s20 + $0x70] sm:$0xff] }
  0xa9   : > { %v9491_v1 = vand.u32 4294901760, %v7922_v51  ;;  %v700_v22 = vand.u32 4294901760, %v699_v63 }
  0xaa   : > { %6223 = vmatpush3.bf16.msra.mxu0 %v7843_v8  ;;  %v9486_v8 = vand.u32 4294901760, %v7895_v20  ;;  %v719_v36 = vand.u32 4294901760, %v7941_v48  ;;  %v693_v6 = vand.u32 4294901760, %v692_v35  ;;  %v9493_v35 = vand.u32 4294901760, %v7935_v9 }
  0xab   : > { %6225 = vmatprep.subr.bf16.mxu0 %v6224_v41 }
  0xac   : > { %v706_v32 = vsub.f32 %v7895_v20, %v9486_v8  ;;  %v686_v8 = vand.u32 4294901760, %v685_v21  ;;  %v7995_v21 = vsub.f32 %v370_v31, %v7957_v28  ;;  %v726_v31 = vand.u32 4294901760, %v7979_v58 }
  0xad   : > { %5217 = vmatmul.mubr.f32.vlgmr.msra.gmra.mrb[0].mxu0 %v493_v50  ;;  %v9490_v50 = vand.u32 4294901760, %v7750_v43 }
  0xae   : > { %6227 = vmatpush3.bf16.msra.mxu0 %v6224_v41  ;;  %5219 = vmatprep.mubr.f32.mxu0 %v503_v3  ;;  %v562_v41 = vsub.f32 %v7922_v51, %v9491_v1  ;;  %v7992_v3 = vsub.f32 %v7925_v4, %v9492_v45  ;;  %v707_v11 = vand.u32 4294901760, %v706_v32  ;;  %v553_v1 = vand.u32 4294901760, %v552_v23 }
  0xaf   : > { %v7984_v12 = vsub.f32 %v7750_v43, %v9490_v50  ;;  %6229 = vmatprep.subr.bf16.mxu0 %v6228_v53  ;;  %v713_v50 = vsub.f32 %v7935_v9, %v9493_v35  ;;  %v720_v51 = vsub.f32 %v7941_v48, %v719_v36  ;;  %v8004_v45 = vsub.f32 %v371_v29, %v7973_v19  ;;  %v374_v43 = vld [vmem:[%s7661_s20 + $0x78] sm:$0xff] }
  0xb0   : > { %v8006_v4 = vand.u32 4294901760, %v372_v27  ;;  %v8010_v32 = vand.u32 4294901760, %v373_v42  ;;  %v9494_v35 = vand.u32 4294901760, %v7760_v47  ;;  %v6236_v23 = vpack.c.bf16 %v693_v6, %v686_v8 }
  0xb1   : > { %5220 = vmatmul.mubr.f32.gmra.mrb[2].mxu0 %v513_v15  ;;  %v733_v63 = vand.u32 4294901760, %v7984_v12  ;;  %v563_v29 = vand.u32 4294901760, %v562_v41  ;;  %v9400_v56 = vand.u32 4294901760, %v7995_v21  ;;  %v573_v13 = vand.u32 4294901760, %v7992_v3 }
  0xb2   : > { %6231 = vmatpush3.bf16.msra.mxu0 %v6228_v53  ;;  %5222 = vmatprep.mubr.f32.mxu0 %v523_v5  ;;  %v8016_v15 = vsub.f32 %v7760_v47, %v9494_v35  ;;  %v9495_v53 = vand.u32 4294901760, %v7767_v52  ;;  %v6240_v55 = vpack.c.bf16 %v707_v11, %v700_v22  ;;  %v714_v24 = vand.u32 4294901760, %v713_v50 }
  0xb3   : > { %6233 = vmatprep.subr.bf16.mxu0 %v6232_v7  ;;  %v721_v47 = vand.u32 4294901760, %v720_v51  ;;  %v8030_v6 = vsub.f32 %v372_v27, %v8006_v4  ;;  %v8032_v41 = vand.u32 4294901760, %v374_v43  ;;  %v734_v11 = vsub.f32 %v7984_v12, %v733_v63 }
  0xb4   : > { %v8022_v5 = vsub.f32 %v7767_v52, %v9495_v53  ;;  %v727_v52 = vsub.f32 %v7979_v58, %v726_v31  ;;  %v8037_v3 = vsub.f32 %v373_v42, %v8010_v32  ;;  %v740_v37 = vand.u32 4294901760, %v8016_v15 }
  0xb5   : > { %5223 = vmatmul.mubr.f32.gmra.mrb[4].mxu0 %v533_v2  ;;  %v9497_v51 = vand.u32 4294901760, %v7728_v33  ;;  %v9498_v27 = vand.u32 4294901760, %v7730_v34  ;;  %v9503_v42 = vand.u32 4294901760, %v7815_v17  ;;  %v9504_v35 = vand.u32 4294901760, %v7820_v26 }
  0xb6   : > { %6235 = vmatpush3.bf16.msra.mxu0 %v6232_v7  ;;  %5225 = vmatprep.mubr.f32.mxu0 %v543_v54  ;;  %v747_v2 = vand.u32 4294901760, %v8022_v5  ;;  %v9500_v7 = vand.u32 4294901760, %v7744_v40  ;;  %v9501_v54 = vand.u32 4294901760, %v7763_v49  ;;  %v592_v8 = vsub.f32 %v7995_v21, %v9400_v56 }
  0xb7   : > { %6237 = vmatprep.subr.bf16.mxu0 %v6236_v23  ;;  %v8045_v22 = vpack.c.bf16 %v9498_v27, %v9497_v51  ;;  %v8057_v53 = vpack.c.bf16 %v9504_v35, %v9503_v42  ;;  %v9507_v51 = vand.u32 4294901760, %v7880_v59  ;;  %v611_v35 = vand.u32 4294901760, %v8030_v6 }
  0xb8   : > { %v8051_v50 = vpack.c.bf16 %v9501_v54, %v9500_v7  ;;  %v9510_v7 = vand.u32 4294901760, %v7895_v20  ;;  %v8080_v56 = vsub.f32 %v374_v43, %v8032_v41  ;;  %v741_v43 = vsub.f32 %v8016_v15, %v740_v37 }
  0xb9   : > { %9499 = vst [vmem:[#allocation35_spill] sm:$0xff] %v8045_v22  ;;  %9505 = vst [vmem:[#allocation37_spill] sm:$0xff] %v8057_v53  ;;  %v8066_v27 = vpack.c.bf16 %v9507_v51, %v9506_v30  ;;  %v9509_v22 = vand.u32 4294901760, %v7890_v14  ;;  %5226 = vmatmul.mubr.f32.gmra.mrb[6].mxu0 %v553_v1  ;;  %v8082_v53 = vpack.c.bf16 %v733_v63, %v726_v31  ;;  %v583_v51 = vand.u32 4294901760, %v582_v10 }
  0xba   : > { %9502 = vst [vmem:[#allocation36_spill] sm:$0xff] %v8051_v50  ;;  %v9511_v50 = vand.u32 4294901760, %v7935_v9  ;;  %v8084_v30 = vpack.c.bf16 %v747_v2, %v740_v37  ;;  %6239 = vmatpush3.bf16.msra.mxu0 %v6236_v23  ;;  %5228 = vmatprep.mubr.f32.mxu0 %v563_v29  ;;  %v728_v1 = vand.u32 4294901760, %v727_v52  ;;  %v748_v31 = vsub.f32 %v8022_v5, %v747_v2 }
  0xbb   : > { %9508 = vst [vmem:[#allocation38_spill] sm:$0xff] %v8066_v27  ;;  %v8072_v54 = vpack.c.bf16 %v9510_v7, %v9509_v22  ;;  %v6244_v27 = vpack.c.bf16 %v721_v47, %v714_v24  ;;  %v9512_v22 = vand.u32 4294901760, %v8004_v45  ;;  %6241 = vmatprep.subr.bf16.mxu0 %v6240_v55  ;;  %v593_v63 = vand.u32 4294901760, %v592_v8 }
  0xbc   : > { %v8076_v42 = vpack.c.bf16 %v719_v36, %v9511_v50  ;;  %v621_v36 = vand.u32 4294901760, %v8037_v3  ;;  %v735_v50 = vand.u32 4294901760, %v734_v11  ;;  %v612_v10 = vsub.f32 %v8030_v6, %v611_v35 }
  0xbd   : > { %v602_v7 = vsub.f32 %v8004_v45, %v9512_v22  ;;  %5229 = vmatmul.mubr.f32.gmra.mrb[8].mxu0 %v573_v13  ;;  %v631_v24 = vand.u32 4294901760, %v8080_v56  ;;  %v742_v52 = vand.u32 4294901760, %v741_v43  ;;  %v749_v11 = vand.u32 4294901760, %v748_v31  ;;  %v9517_v43 = vld [vmem:[#allocation17_spill] sm:$0xff]  ;;  %v9518_v31 = vld [vmem:[#allocation24_spill] sm:$0xff] }
  0xbe   : > { %6243 = vmatpush3.bf16.msra.mxu0 %v6240_v55  ;;  %5231 = vmatprep.mubr.f32.mxu0 %v583_v51  ;;  %v622_v29 = vsub.f32 %v8037_v3, %v621_v36  ;;  %v6248_v47 = vpack.c.bf16 %v735_v50, %v728_v1  ;;  %v613_v13 = vand.u32 4294901760, %v612_v10  ;;  %v6256_v51 = vpack.c.bf16 %v7730_v34, %v7728_v33  ;;  %v9516_v50 = vld [vmem:[#allocation23_spill] sm:$0xff]  ;;  %v9520_v10 = vld [vmem:[#allocation18_spill] sm:$0xff] }
  0xbf   : > { %v603_v23 = vand.u32 4294901760, %v602_v7  ;;  %6245 = vmatprep.subr.bf16.mxu0 %v6244_v27  ;;  %v632_v8 = vsub.f32 %v8080_v56, %v631_v24  ;;  %v6252_v55 = vpack.c.bf16 %v749_v11, %v742_v52  ;;  %v6264_v22 = vpack.c.bf16 %v7820_v26, %v7815_v17  ;;  %v8134_v17 = vld [vmem:[#allocation7] sm:$0xff]  ;;  %v8136_v26 = vld [vmem:[#allocation7 + $0x8] sm:$0xff]  ;;  %v9515_v7 = vld [vmem:[#allocation21_spill] sm:$0xff] }
  0xc0   : > { %v623_v37 = vand.u32 4294901760, %v622_v29  ;;  %v6268_v33 = vpack.c.bf16 %v7880_v59, %v7874_v16  ;;  %v6272_v34 = vpack.c.bf16 %v7895_v20, %v7890_v14  ;;  %v6284_v59 = vpack.c.bf16 %v8022_v5, %v8016_v15  ;;  %v8138_v16 = vld [vmem:[#allocation7 + $0x10] sm:$0xff]  ;;  %v9513_v14 = vld [vmem:[#allocation19_spill] sm:$0xff]  ;;  %v9522_v29 = vld [vmem:[#allocation30_spill] sm:$0xff] }
  0xc1   : > { %5232 = vmatmul.mubr.f32.gmra.mrb[10].mxu0 %v593_v63  ;;  %v633_v2 = vand.u32 4294901760, %v632_v8  ;;  %v1724_v20 = vand.u32 4294901760, %v8134_v17  ;;  %v9519_v63 = vld [vmem:[#allocation26_spill] sm:$0xff]  ;;  %v9524_v52 = vld [vmem:[#allocation31_spill] sm:$0xff]  ;;  %v9525_v11 = vld [vmem:[#allocation32_spill] sm:$0xff] }
  0xc2   : > { %6247 = vmatpush3.bf16.msra.mxu0 %v6244_v27  ;;  %5234 = vmatprep.mubr.f32.mxu0 %v603_v23  ;;  %v6260_v27 = vpack.c.bf16 %v7763_v49, %v7744_v40  ;;  %v6276_v40 = vpack.c.bf16 %v7941_v48, %v7935_v9  ;;  %v6280_v49 = vpack.c.bf16 %v7984_v12, %v7979_v58  ;;  %v1727_v9 = vand.u32 4294901760, %v8136_v26  ;;  %v8143_v48 = vld [vmem:[#allocation7 + $0x18] sm:$0xff]  ;;  %v9514_v12 = vld [vmem:[#allocation16_spill] sm:$0xff]  ;;  %v9521_v23 = vld [vmem:[#allocation27_spill] sm:$0xff] }
  0xc3   : > { %6249 = vmatprep.subr.bf16.mxu0 %v6248_v47  ;;  %v1730_v58 = vand.u32 4294901760, %v8138_v16  ;;  %v1733_v15 = vand.u32 4294901760, %v8143_v48  ;;  %v9527_v8 = vld [vmem:[#allocation33_spill] sm:$0xff] }
  0xc4   : > { %v8152_v5 = vpack.c.bf16 %v1727_v9, %v1724_v20 }
  0xc5   : > { %5235 = vmatmul.mubr.f32.gmra.mrb[12].mxu0 %v613_v13  ;;  %v8159_v1 = vpack.c.bf16 %v1733_v15, %v1730_v58  ;;  %v9526_v13 = vld [vmem:[#allocation22_spill] sm:$0xff] }
  0xc6   : > { %6251 = vmatpush3.bf16.msra.mxu0 %v6248_v47  ;;  %5237 = vmatprep.mubr.f32.mxu0 %v623_v37  ;;  %v9523_v47 = vld [vmem:[#allocation20_spill] sm:$0xff]  ;;  %v9528_v37 = vld [vmem:[#allocation34_spill] sm:$0xff] }
  0xc7   : > { %6253 = vmatprep.subr.bf16.mxu0 %v6252_v55  ;;  %6385 = vmatprep.subr.bf16.mxu1 %v8152_v5 }
  0xc8   : > { %6387 = vmatpush3.bf16.msra.mxu1 %v8152_v5 }
  0xc9   : > { %5238 = vmatmul.mubr.f32.gmra.mrb[14].mxu0 %v633_v2  ;;  %6389 = vmatprep.subr.bf16.mxu1 %v8159_v1  ;;  %v9530_v2 = vld [vmem:[#allocation28_spill] sm:$0xff] }
  0xca   : > { %6255 = vmatpush3.bf16.msra.mxu0 %v6252_v55  ;;  %5272 = vmatprep.mubr.f32.mxu0 %v7693_v18  ;;  %v9529_v55 = vld [vmem:[#allocation25_spill] sm:$0xff] }
  0xcb   : > { %6257 = vmatprep.subr.bf16.mxu0 %v6256_v51 }
  0xcc   : > { %6391 = vmatpush3.bf16.msra.mxu1 %v8159_v1 }
  0xcd   : > { %5273 = vmatmul.mubr.f32.vlgmr.msra.gmra.mrb[0].mxu0 %v7711_v25 }
  0xce   : > { %6259 = vmatpush3.bf16.msra.mxu0 %v6256_v51  ;;  %5275 = vmatprep.mubr.f32.mxu0 %v7740_v38  ;;  %v9531_v51 = vld [vmem:[#allocation29_spill] sm:$0xff] }
  0xcf   : > { %6261 = vmatprep.subr.bf16.mxu0 %v6260_v27 }
  0xd1   : > { %5276 = vmatmul.mubr.f32.gmra.mrb[2].mxu0 %v7742_v39 }
  0xd2   : > { %6263 = vmatpush3.bf16.msra.mxu0 %v6260_v27  ;;  %5278 = vmatprep.mubr.f32.mxu0 %v7782_v61  ;;  %v9532_v27 = vand.u32 4294901760, %v9513_v14 }
  0xd3   : > { %6265 = vmatprep.subr.bf16.mxu0 %v6264_v22 }
  0xd5   : > { %5279 = vmatmul.mubr.f32.gmra.mrb[4].mxu0 %v7784_v62 }
  0xd6   : > { %6267 = vmatpush3.bf16.msra.mxu0 %v6264_v22  ;;  %5281 = vmatprep.mubr.f32.mxu0 %v7829_v44  ;;  %v9533_v22 = vld [vmem:[#allocation35_spill] sm:$0xff] }
  0xd7   : > { %6269 = vmatprep.subr.bf16.mxu0 %v6268_v33 }
  0xd9   : > { %5282 = vmatmul.mubr.f32.gmra.mrb[6].mxu0 %v7863_v60 }
  0xda   : > { %6271 = vmatpush3.bf16.msra.mxu0 %v6268_v33  ;;  %5284 = vmatprep.mubr.f32.mxu0 %v7882_v57  ;;  %v9534_v33 = vand.u32 4294901760, %v9515_v7 }
  0xdb   : > { %6273 = vmatprep.subr.bf16.mxu0 %v6272_v34 }
  0xdd   : > { %5285 = vmatmul.mubr.f32.gmra.mrb[8].mxu0 %v7884_v46 }
  0xde   : > { %6275 = vmatpush3.bf16.msra.mxu0 %v6272_v34  ;;  %5287 = vmatprep.mubr.f32.mxu0 %v7929_v0  ;;  %v9535_v34 = vand.u32 4294901760, %v9516_v50 }
  0xdf   : > { %6277 = vmatprep.subr.bf16.mxu0 %v6276_v40 }
  0xe1   : > { %5288 = vmatmul.mubr.f32.gmra.mrb[10].mxu0 %v7957_v28 }
  0xe2   : > { %6279 = vmatpush3.bf16.msra.mxu0 %v6276_v40  ;;  %5290 = vmatprep.mubr.f32.mxu0 %v7973_v19  ;;  %v9536_v40 = vld [vmem:[#allocation36_spill] sm:$0xff] }
  0xe3   : > { %6281 = vmatprep.subr.bf16.mxu0 %v6280_v49 }
  0xe5   : > { %5291 = vmatmul.mubr.f32.gmra.mrb[12].mxu0 %v8006_v4 }
  0xe6   : > { %6283 = vmatpush3.bf16.msra.mxu0 %v6280_v49  ;;  %5293 = vmatprep.mubr.f32.mxu0 %v8010_v32  ;;  %v9537_v49 = vand.u32 4294901760, %v9518_v31 }
  0xe7   : > { %6285 = vmatprep.subr.bf16.mxu0 %v6284_v59 }
  0xe9   : > { %5294 = vmatmul.mubr.f32.gmra.mrb[14].mxu0 %v8032_v41 }
  0xea   : > { %6287 = vmatpush3.bf16.msra.mxu0 %v6284_v59  ;;  %5328 = vmatprep.mubr.f32.mxu0 %v9513_v14  ;;  %v9538_v59 = vand.u32 4294901760, %v9519_v63  ;;  %v9539_v14 = vld [vmem:[#allocation37_spill] sm:$0xff] }
  0xeb   : > { %6289 = vmatprep.subr.bf16.mxu0 %v9514_v12 }
  0xed   : > { %5329 = vmatmul.mubr.f32.vlgmr.msra.gmra.mrb[0].mxu0 %v9515_v7  ;;  %v9540_v7 = vand.u32 4294901760, %v9521_v23 }
  0xee   : > { %6291 = vmatpush3.bf16.msra.mxu0 %v9514_v12  ;;  %5331 = vmatprep.mubr.f32.mxu0 %v9516_v50  ;;  %v9541_v50 = vand.u32 4294901760, %v9522_v29 }
  0xef   : > { %6293 = vmatprep.subr.bf16.mxu0 %v9517_v43 }
  0xf1   : > { %5332 = vmatmul.mubr.f32.gmra.mrb[2].mxu0 %v9518_v31  ;;  %v9543_v31 = vand.u32 4294901760, %v9524_v52 }
  0xf2   : > { %6295 = vmatpush3.bf16.msra.mxu0 %v9517_v43  ;;  %5334 = vmatprep.mubr.f32.mxu0 %v9519_v63  ;;  %v9544_v63 = vand.u32 4294901760, %v9525_v11 }
  0xf3   : > { %6297 = vmatprep.subr.bf16.mxu0 %v9520_v10 }
  0xf5   : > { %5335 = vmatmul.mubr.f32.gmra.mrb[4].mxu0 %v9521_v23  ;;  %v9545_v23 = vand.u32 4294901760, %v9527_v8 }
  0xf6   : > { %6299 = vmatpush3.bf16.msra.mxu0 %v9520_v10  ;;  %5337 = vmatprep.mubr.f32.mxu0 %v9522_v29  ;;  %v9546_v29 = vand.u32 4294901760, %v9528_v37 }
  0xf7   : > { %6301 = vmatprep.subr.bf16.mxu0 %v9523_v47 }
  0xf9   : > { %5338 = vmatmul.mubr.f32.gmra.mrb[6].mxu0 %v9524_v52  ;;  %v9547_v52 = vand.u32 4294901760, %v7995_v21 }
  0xfa   : > { %6303 = vmatpush3.bf16.msra.mxu0 %v9523_v47  ;;  %5340 = vmatprep.mubr.f32.mxu0 %v9525_v11  ;;  %v9548_v11 = vand.u32 4294901760, %v8004_v45 }
  0xfb   : > { %6305 = vmatprep.subr.bf16.mxu0 %v9526_v13 }
  0xfd   : > { %5341 = vmatmul.mubr.f32.gmra.mrb[8].mxu0 %v9527_v8 }
  0xfe   : > { %6307 = vmatpush3.bf16.msra.mxu0 %v9526_v13  ;;  %5343 = vmatprep.mubr.f32.mxu0 %v9528_v37 }
  0xff   : > { %6309 = vmatprep.subr.bf16.mxu0 %v9529_v55 }
 0x101   : > { %5344 = vmatmul.mubr.f32.gmra.mrb[10].mxu0 %v7995_v21  ;;  %v1710_v21 = vld [vmem:[#allocation7 + $0x50] sm:$0xff] }
 0x102   : > { %6311 = vmatpush3.bf16.msra.mxu0 %v9529_v55  ;;  %5346 = vmatprep.mubr.f32.mxu0 %v8004_v45  ;;  %v1711_v45 = vld [vmem:[#allocation7 + $0x58] sm:$0xff] }
 0x103   : > { %6313 = vmatprep.subr.bf16.mxu0 %v9530_v2 }
 0x105   : > { %5347 = vmatmul.mubr.f32.gmra.mrb[12].mxu0 %v8030_v6  ;;  %v1757_v6 = vand.u32 4294901760, %v1711_v45 }
 0x106   : > { %6315 = vmatpush3.bf16.msra.mxu0 %v9530_v2  ;;  %5349 = vmatprep.mubr.f32.mxu0 %v8037_v3  ;;  %v1712_v3 = vld [vmem:[#allocation7 + $0x60] sm:$0xff] }
 0x107   : > { %6317 = vmatprep.subr.bf16.mxu0 %v9531_v51 }
 0x109   : > { %5350 = vmatmul.mubr.f32.gmra.mrb[14].mxu0 %v8080_v56 }
 0x10a   : > { %6319 = vmatpush3.bf16.msra.mxu0 %v9531_v51  ;;  %5384 = vmatprep.mubr.f32.mxu0 %v9532_v27  ;;  %v9542_v27 = vld [vmem:[#allocation38_spill] sm:$0xff] }
 0x10b   : > { %6321 = vmatprep.subr.bf16.mxu0 %v9533_v22 }
 0x10d   : > { %5385 = vmatmul.mubr.f32.vlgmr.msra.gmra.mrb[0].mxu0 %v9534_v33 }
 0x10e   : > { %6323 = vmatpush3.bf16.msra.mxu0 %v9533_v22  ;;  %5387 = vmatprep.mubr.f32.mxu0 %v9535_v34 }
 0x10f   : > { %6325 = vmatprep.subr.bf16.mxu0 %v9536_v40 }
 0x111   : > { %5388 = vmatmul.mubr.f32.gmra.mrb[2].mxu0 %v9537_v49 }
 0x112   : > { %6327 = vmatpush3.bf16.msra.mxu0 %v9536_v40  ;;  %5390 = vmatprep.mubr.f32.mxu0 %v9538_v59 }
 0x113   : > { %6329 = vmatprep.subr.bf16.mxu0 %v9539_v14 }
 0x115   : > { %5391 = vmatmul.mubr.f32.gmra.mrb[4].mxu0 %v9540_v7 }
 0x116   : > { %6331 = vmatpush3.bf16.msra.mxu0 %v9539_v14  ;;  %5393 = vmatprep.mubr.f32.mxu0 %v9541_v50 }
 0x117   : > { %6333 = vmatprep.subr.bf16.mxu0 %v9542_v27 }
 0x119   : > { %5394 = vmatmul.mubr.f32.gmra.mrb[6].mxu0 %v9543_v31 }
 0x11a   : > { %6335 = vmatpush3.bf16.msra.mxu0 %v9542_v27  ;;  %5396 = vmatprep.mubr.f32.mxu0 %v9544_v63 }
 0x11b   : > { %6337 = vmatprep.subr.bf16.mxu0 %v8072_v54 }
 0x11d   : > { %5397 = vmatmul.mubr.f32.gmra.mrb[8].mxu0 %v9545_v23 }
 0x11e   : > { %6339 = vmatpush3.bf16.msra.mxu0 %v8072_v54  ;;  %5399 = vmatprep.mubr.f32.mxu0 %v9546_v29  ;;  %v1760_v54 = vand.u32 4294901760, %v1712_v3 }
 0x11f   : > { %6341 = vmatprep.subr.bf16.mxu0 %v8076_v42 }
 0x121   : > { %5400 = vmatmul.mubr.f32.gmra.mrb[10].mxu0 %v9547_v52 }
 0x122   : > { %6343 = vmatpush3.bf16.msra.mxu0 %v8076_v42  ;;  %5402 = vmatprep.mubr.f32.mxu0 %v9548_v11 }
 0x123   : > { %6345 = vmatprep.subr.bf16.mxu0 %v8082_v53 }
 0x125   : > { %5403 = vmatmul.mubr.f32.gmra.mrb[12].mxu0 %v611_v35 }
 0x126   : > { %6347 = vmatpush3.bf16.msra.mxu0 %v8082_v53  ;;  %5405 = vmatprep.mubr.f32.mxu0 %v621_v36  ;;  %v1713_v53 = vld [vmem:[#allocation7 + $0x68] sm:$0xff]  ;;  %v8316_v36 = vsub.f32 %v8136_v26, %v1727_v9 }
 0x127   : > { %6349 = vmatprep.subr.bf16.mxu0 %v8084_v30  ;;  %v1763_v42 = vand.u32 4294901760, %v1713_v53 }
 0x128   : > { %9549 = vst [vmem:[#allocation19_spill] sm:$0xff] %v8316_v36 }
 0x129   : > { %5406 = vmatmul.mubr.f32.gmra.mrb[14].mxu0 %v631_v24  ;;  %v8306_v35 = vpack.c.bf16 %v1763_v42, %v1760_v54  ;;  %v1714_v24 = vld [vmem:[#allocation7 + $0x70] sm:$0xff] }
 0x12a   : > { %6351 = vmatpush3.bf16.msra.mxu0 %v8084_v30  ;;  %5440 = vmatprep.mubr.f32.mxu0 %v7693_v18  ;;  %v8311_v30 = vsub.f32 %v8134_v17, %v1724_v20 }
 0x12b   : > { %6353 = vmatprep.subr.bf16.mxu0 %v9514_v12 }
 0x12d   : > { %5441 = vmatmul.mubr.f32.vlgmr.msra.gmra.mrb[0].mxu0 %v7711_v25 }
 0x12e   : > { %6355 = vmatpush3.bf16.msra.mxu0 %v9514_v12  ;;  %5443 = vmatprep.mubr.f32.mxu0 %v7740_v38  ;;  %v1715_v12 = vld [vmem:[#allocation7 + $0x78] sm:$0xff] }
 0x12f   : > { %6357 = vmatprep.subr.bf16.mxu0 %v9517_v43 }
 0x131   : > { %5444 = vmatmul.mubr.f32.gmra.mrb[2].mxu0 %v7742_v39 }
 0x132   : > { %6359 = vmatpush3.bf16.msra.mxu0 %v9517_v43  ;;  %5446 = vmatprep.mubr.f32.mxu0 %v7782_v61  ;;  %v1766_v43 = vand.u32 4294901760, %v1714_v24 }
 0x133   : > { %6361 = vmatprep.subr.bf16.mxu0 %v9520_v10 }
 0x135   : > { %5447 = vmatmul.mubr.f32.gmra.mrb[4].mxu0 %v7784_v62 }
 0x136   : > { %6363 = vmatpush3.bf16.msra.mxu0 %v9520_v10  ;;  %5449 = vmatprep.mubr.f32.mxu0 %v7829_v44  ;;  %v1769_v10 = vand.u32 4294901760, %v1715_v12 }
 0x137   : > { %6365 = vmatprep.subr.bf16.mxu0 %v9523_v47 }
 0x138   : > { %v8322_v8 = vpack.c.bf16 %v1769_v10, %v1766_v43 }
 0x139   : > { %5450 = vmatmul.mubr.f32.gmra.mrb[6].mxu0 %v7863_v60 }
 0x13a   : > { %6367 = vmatpush3.bf16.msra.mxu0 %v9523_v47  ;;  %5452 = vmatprep.mubr.f32.mxu0 %v7882_v57  ;;  %v9419_v47 = vand.u32 4294901760, %v8311_v30 }
 0x13b   : > { %6369 = vmatprep.subr.bf16.mxu0 %v9526_v13 }
 0x13c   : > { %v1968_v17 = vsub.f32 %v8311_v30, %v9419_v47 }
 0x13d   : > { %5453 = vmatmul.mubr.f32.gmra.mrb[8].mxu0 %v7884_v46 }
 0x13e   : > { %6371 = vmatpush3.bf16.msra.mxu0 %v9526_v13  ;;  %5455 = vmatprep.mubr.f32.mxu0 %v7929_v0  ;;  %v9418_v13 = vand.u32 4294901760, %v8316_v36  ;;  %v1969_v20 = vand.u32 4294901760, %v1968_v17 }
 0x13f   : > { %6373 = vmatprep.subr.bf16.mxu0 %v9529_v55 }
 0x140   : > { %v1975_v26 = vsub.f32 %v8316_v36, %v9418_v13 }
 0x141   : > { %5456 = vmatmul.mubr.f32.gmra.mrb[10].mxu0 %v7957_v28 }
 0x142   : > { %6375 = vmatpush3.bf16.msra.mxu0 %v9529_v55  ;;  %5458 = vmatprep.mubr.f32.mxu0 %v7973_v19  ;;  %v1976_v9 = vand.u32 4294901760, %v1975_v26 }
 0x143   : > { %6377 = vmatprep.subr.bf16.mxu0 %v9530_v2 }
 0x144   : > { %v8332_v37 = vpack.c.bf16 %v1976_v9, %v1969_v20 }
 0x145   : > { %5459 = vmatmul.mubr.f32.gmra.mrb[12].mxu0 %v8006_v4 }
 0x146   : > { %6379 = vmatpush3.bf16.msra.mxu0 %v9530_v2  ;;  %5461 = vmatprep.mubr.f32.mxu0 %v8010_v32 }
 0x147   : > { %6381 = vmatprep.subr.bf16.mxu0 %v9531_v51 }
 0x149   : > { %5462 = vmatmul.mubr.f32.gmra.mrb[14].mxu0 %v8032_v41 }
 0x14a   : > { %6383 = vmatpush3.bf16.msra.mxu0 %v9531_v51  ;;  %5496 = vmatprep.mubr.f32.mxu0 %v7693_v18  ;;  %v1704_v18 = vld [vmem:[#allocation7 + $0x20] sm:$0xff] }
 0x14d   : > { %5497 = vmatmul.mubr.f32.vlgmr.msra.gmra.mrb[0].mxu0 %v7711_v25  ;;  %v1705_v25 = vld [vmem:[#allocation7 + $0x28] sm:$0xff] }
 0x14e   : > { %5499 = vmatprep.mubr.f32.mxu0 %v7740_v38  ;;  %v1736_v38 = vand.u32 4294901760, %v1704_v18 }
 0x150   : > { %v8334_v55 = vsub.f32 %v1704_v18, %v1736_v38 }
 0x151   : > { %5500 = vmatmul.mubr.f32.gmra.mrb[2].mxu0 %v7742_v39  ;;  %v1739_v39 = vand.u32 4294901760, %v1705_v25 }
 0x152   : > { %5502 = vmatprep.mubr.f32.mxu0 %v7782_v61  ;;  %9550 = vst [vmem:[#allocation16_spill] sm:$0xff] %v8334_v55  ;;  %v9414_v51 = vand.u32 4294901760, %v8334_v55 }
 0x153   : > { %v8290_v56 = vpack.c.bf16 %v1739_v39, %v1736_v38  ;;  %v8336_v2 = vsub.f32 %v1705_v25, %v1739_v39 }
 0x154   : > { %v1996_v33 = vsub.f32 %v8334_v55, %v9414_v51 }
 0x155   : > { %5503 = vmatmul.mubr.f32.gmra.mrb[4].mxu0 %v7784_v62  ;;  %6393 = vmatprep.subr.bf16.mxu1 %v8290_v56  ;;  %v1708_v62 = vld [vmem:[#allocation7 + $0x40] sm:$0xff]  ;;  %9551 = vst [vmem:[#allocation21_spill] sm:$0xff] %v8336_v2  ;;  %v9413_v22 = vand.u32 4294901760, %v8336_v2 }
 0x156   : > { %5505 = vmatprep.mubr.f32.mxu0 %v7829_v44  ;;  %6395 = vmatpush3.bf16.msra.mxu1 %v8290_v56  ;;  %v1748_v44 = vand.u32 4294901760, %v1708_v62  ;;  %v1997_v59 = vand.u32 4294901760, %v1996_v33 }
 0x157   : > { %v2003_v34 = vsub.f32 %v8336_v2, %v9413_v22 }
 0x158   : > { %v8361_v23 = vsub.f32 %v1708_v62, %v1748_v44 }
 0x159   : > { %5506 = vmatmul.mubr.f32.gmra.mrb[6].mxu0 %v7863_v60  ;;  %v2004_v14 = vand.u32 4294901760, %v2003_v34 }
 0x15a   : > { %5508 = vmatprep.mubr.f32.mxu0 %v7882_v57  ;;  %v1706_v57 = vld [vmem:[#allocation7 + $0x30] sm:$0xff]  ;;  %9554 = vst [vmem:[#allocation24_spill] sm:$0xff] %v8361_v23  ;;  %v9410_v18 = vand.u32 4294901760, %v8361_v23 }
 0x15b   : > { %v1742_v60 = vand.u32 4294901760, %v1706_v57  ;;  %v8353_v27 = vpack.c.bf16 %v2004_v14, %v1997_v59 }
 0x15c   : > { %v2024_v39 = vsub.f32 %v8361_v23, %v9410_v18 }
 0x15d   : > { %5509 = vmatmul.mubr.f32.gmra.mrb[8].mxu0 %v7884_v46  ;;  %v1707_v46 = vld [vmem:[#allocation7 + $0x38] sm:$0xff]  ;;  %v8347_v40 = vsub.f32 %v1706_v57, %v1742_v60 }
 0x15e   : > { %5511 = vmatprep.mubr.f32.mxu0 %v7929_v0  ;;  %v1745_v61 = vand.u32 4294901760, %v1707_v46  ;;  %v1709_v0 = vld [vmem:[#allocation7 + $0x48] sm:$0xff] }
 0x15f   : > { %9552 = vst [vmem:[#allocation23_spill] sm:$0xff] %v8347_v40  ;;  %v9412_v7 = vand.u32 4294901760, %v8347_v40 }
 0x160   : > { %v8349_v49 = vsub.f32 %v1707_v46, %v1745_v61  ;;  %v8374_v46 = vsub.f32 %v1711_v45, %v1757_v6  ;;  %v8387_v45 = vsub.f32 %v1712_v3, %v1760_v54  ;;  %v8405_v54 = vsub.f32 %v1715_v12, %v1769_v10 }
 0x161   : > { %5512 = vmatmul.mubr.f32.gmra.mrb[10].mxu0 %v7957_v28  ;;  %v2010_v31 = vsub.f32 %v8347_v40, %v9412_v7  ;;  %v8421_v10 = vpack.c.bf16 %v8316_v36, %v8311_v30 }
 0x162   : > { %5514 = vmatprep.mubr.f32.mxu0 %v7973_v19  ;;  %v8294_v19 = vpack.c.bf16 %v1745_v61, %v1742_v60  ;;  %9553 = vst [vmem:[#allocation17_spill] sm:$0xff] %v8349_v49  ;;  %v9411_v50 = vand.u32 4294901760, %v8349_v49  ;;  %9557 = vst [vmem:[#allocation27_spill] sm:$0xff] %v8374_v46  ;;  %v2025_v61 = vand.u32 4294901760, %v2024_v39  ;;  %v9406_v20 = vand.u32 4294901760, %v8387_v45 }
 0x163   : > { %v2011_v52 = vand.u32 4294901760, %v2010_v31  ;;  %9558 = vst [vmem:[#allocation30_spill] sm:$0xff] %v8387_v45  ;;  %9561 = vst [vmem:[#allocation32_spill] sm:$0xff] %v8405_v54  ;;  %v9403_v31 = vand.u32 4294901760, %v8405_v54  ;;  %v8425_v39 = vpack.c.bf16 %v8336_v2, %v8334_v55 }
 0x164   : > { %6397 = vmatprep.subr.bf16.mxu1 %v8294_v19  ;;  %v2017_v63 = vsub.f32 %v8349_v49, %v9411_v50  ;;  %v2052_v34 = vsub.f32 %v8387_v45, %v9406_v20 }
 0x165   : > { %5515 = vmatmul.mubr.f32.gmra.mrb[12].mxu0 %v8006_v4  ;;  %v1751_v4 = vand.u32 4294901760, %v1709_v0  ;;  %6399 = vmatpush3.bf16.msra.mxu1 %v8294_v19 }
 0x166   : > { %5517 = vmatprep.mubr.f32.mxu0 %v8010_v32  ;;  %v1754_v32 = vand.u32 4294901760, %v1710_v21  ;;  %v2018_v11 = vand.u32 4294901760, %v2017_v63 }
 0x167   : > { %v8298_v28 = vpack.c.bf16 %v1751_v4, %v1748_v44  ;;  %v8363_v29 = vsub.f32 %v1709_v0, %v1751_v4  ;;  %v9407_v0 = vand.u32 4294901760, %v8374_v46 }
 0x168   : > { %v8367_v38 = vpack.c.bf16 %v2018_v11, %v2011_v52  ;;  %v8372_v57 = vsub.f32 %v1710_v21, %v1754_v32  ;;  %v2073_v11 = vsub.f32 %v8405_v54, %v9403_v31 }
 0x169   : > { %5518 = vmatmul.mubr.f32.gmra.mrb[14].mxu0 %v8032_v41  ;;  %6401 = vmatprep.subr.bf16.mxu1 %v8298_v28  ;;  %v8302_v41 = vpack.c.bf16 %v1757_v6, %v1754_v32  ;;  %9555 = vst [vmem:[#allocation26_spill] sm:$0xff] %v8363_v29  ;;  %v9409_v25 = vand.u32 4294901760, %v8363_v29  ;;  %v2045_v21 = vsub.f32 %v8374_v46, %v9407_v0 }
 0x16a   : > { %6403 = vmatpush3.bf16.msra.mxu1 %v8298_v28  ;;  %9556 = vst [vmem:[#allocation18_spill] sm:$0xff] %v8372_v57  ;;  %v9408_v62 = vand.u32 4294901760, %v8372_v57  ;;  %v8389_v32 = vsub.f32 %v1713_v53, %v1763_v42  ;;  %v8403_v53 = vsub.f32 %v1714_v24, %v1766_v43  ;;  %v2053_v42 = vand.u32 4294901760, %v2052_v34 }
 0x16b   : > { %6405 = vmatprep.subr.bf16.mxu1 %v8302_v41  ;;  %v2031_v60 = vsub.f32 %v8363_v29, %v9409_v25  ;;  %v2046_v26 = vand.u32 4294901760, %v2045_v21  ;;  %v2074_v43 = vand.u32 4294901760, %v2073_v11 }
 0x16c   : > { %v2038_v4 = vsub.f32 %v8372_v57, %v9408_v62  ;;  %9559 = vst [vmem:[#allocation20_spill] sm:$0xff] %v8389_v32  ;;  %v9405_v9 = vand.u32 4294901760, %v8389_v32  ;;  %9560 = vst [vmem:[#allocation31_spill] sm:$0xff] %v8403_v53  ;;  %v9404_v14 = vand.u32 4294901760, %v8403_v53  ;;  %v8445_v21 = vpack.c.bf16 %v8405_v54, %v8403_v53 }
 0x16d   : > { %v2032_v44 = vand.u32 4294901760, %v2031_v60  ;;  %v8429_v60 = vpack.c.bf16 %v8349_v49, %v8347_v40 }
 0x16e   : > { %6407 = vmatpush3.bf16.msra.mxu1 %v8302_v41  ;;  %v2039_v17 = vand.u32 4294901760, %v2038_v4  ;;  %v2059_v3 = vsub.f32 %v8389_v32, %v9405_v9  ;;  %v2066_v52 = vsub.f32 %v8403_v53, %v9404_v14  ;;  %v8441_v4 = vpack.c.bf16 %v8389_v32, %v8387_v45 }
 0x16f   : > { %6409 = vmatprep.subr.bf16.mxu1 %v8306_v35  ;;  %v8391_v6 = vpack.c.bf16 %v2032_v44, %v2025_v61  ;;  %v8433_v61 = vpack.c.bf16 %v8363_v29, %v8361_v23  ;;  %v8437_v44 = vpack.c.bf16 %v8374_v46, %v8372_v57 }
 0x170   : > { %v8395_v33 = vpack.c.bf16 %v2046_v26, %v2039_v17  ;;  %v2060_v59 = vand.u32 4294901760, %v2059_v3  ;;  %v2067_v24 = vand.u32 4294901760, %v2066_v52  ;;  %v8450_v17 = vld [vmem:[%s9332_s2] ss:$0 sm:$0xff] }
 0x172   : > { %6411 = vmatpush3.bf16.msra.mxu1 %v8306_v35  ;;  %v8409_v63 = vpack.c.bf16 %v2060_v59, %v2053_v42  ;;  %v8417_v12 = vpack.c.bf16 %v2074_v43, %v2067_v24  ;;  %v8458_v24 = vsub.f32 %v8138_v16, %v1730_v58 }
 0x173   : > { %6413 = vmatprep.subr.bf16.mxu1 %v8322_v8 }
 0x176   : > { %6415 = vmatpush3.bf16.msra.mxu1 %v8322_v8 }
 0x177   : > { %6417 = vmatprep.subr.bf16.mxu1 %v8332_v37 }
 0x220   : > { %v5498_v26 = vpop.f32.mrb[0].mxu0 }
 0x221   : > { %v6768_v34 = vadd.f32 %v5498_v26, %v8450_v17  ;;  %v1590_v3 = vpop.f32.mrb[1].mxu0  ;;  %v8464_v26 = vsub.f32 %v8143_v48, %v1733_v15 }
 0x222   : > { %v6769_v42 = vadd.f32 %v8450_v17, %v1590_v3 }
 0x223   : > { %7119 = vtanh.f32 %v6768_v34  ;;  %v9415_v16 = vand.u32 4294901760, %v8464_v26 }
 0x224   : > { %7121 = vtanh.f32 %v6769_v42  ;;  %v5501_v59 = vpop.f32.mrb[2].mxu0 }
 0x225   : > { %v6770_v52 = vadd.f32 %v5501_v59, %v8450_v17  ;;  %v1602_v11 = vpop.f32.mrb[3].mxu0  ;;  %v9416_v59 = vand.u32 4294901760, %v8458_v24 }
 0x226   : > { %v6771_v43 = vadd.f32 %v8450_v17, %v1602_v11 }
 0x227   : > { %7123 = vtanh.f32 %v6770_v52  ;;  %v1982_v15 = vsub.f32 %v8458_v24, %v9416_v59 }
 0x228   : > { %7125 = vtanh.f32 %v6771_v43  ;;  %v5504_v34 = vpop.f32.mrb[4].mxu0 }
 0x229   : > { %v6772_v3 = vadd.f32 %v5504_v34, %v8450_v17  ;;  %v1614_v42 = vpop.f32.mrb[5].mxu0 }
 0x22a   : > { %v6773_v31 = vadd.f32 %v8450_v17, %v1614_v42  ;;  %v1989_v42 = vsub.f32 %v8464_v26, %v9415_v16 }
 0x22b   : > { %7127 = vtanh.f32 %v6772_v3 }
 0x22c   : > { %7129 = vtanh.f32 %v6773_v31  ;;  %v5507_v58 = vpop.f32.mrb[6].mxu0 }
 0x22d   : > { %v7120_v11 = vpop.eup %7119  ;;  %v6774_v14 = vadd.f32 %v5507_v58, %v8450_v17  ;;  %v1626_v48 = vpop.f32.mrb[7].mxu0 }
 0x22e   : > { %v7122_v52 = vpop.eup %7121  ;;  %v8474_v43 = vand.u32 4294901760, %v7120_v11  ;;  %v6775_v34 = vadd.f32 %v8450_v17, %v1626_v48  ;;  %v1983_v48 = vand.u32 4294901760, %v1982_v15 }
 0x22f   : > { %v8480_v3 = vand.u32 4294901760, %v7122_v52  ;;  %7131 = vtanh.f32 %v6774_v14 }
 0x230   : > { %7133 = vtanh.f32 %v6775_v34  ;;  %v5510_v31 = vpop.f32.mrb[8].mxu0  ;;  %v8483_v58 = vsub.f32 %v7120_v11, %v8474_v43  ;;  %v1990_v34 = vand.u32 4294901760, %v1989_v42 }
 0x231   : > { %v7124_v9 = vpop.eup %7123  ;;  %v6776_v20 = vadd.f32 %v5510_v31, %v8450_v17  ;;  %v1638_v0 = vpop.f32.mrb[9].mxu0  ;;  %v8487_v62 = vsub.f32 %v7122_v52, %v8480_v3 }
 0x232   : > { %v7126_v25 = vpop.eup %7125  ;;  %v8489_v18 = vand.u32 4294901760, %v7124_v9  ;;  %v6777_v50 = vadd.f32 %v8450_v17, %v1638_v0  ;;  %v9417_v14 = vand.u32 4294901760, %v8483_v58 }
 0x233   : > { %v8493_v7 = vand.u32 4294901760, %v7126_v25  ;;  %7135 = vtanh.f32 %v6776_v20  ;;  %v9421_v11 = vand.u32 4294901760, %v8487_v62 }
 0x234   : > { %7137 = vtanh.f32 %v6777_v50  ;;  %v5513_v31 = vpop.f32.mrb[10].mxu0  ;;  %v1817_v52 = vsub.f32 %v8483_v58, %v9417_v14  ;;  %v8500_v15 = vsub.f32 %v7124_v9, %v8489_v18  ;;  %v6420_v9 = vpack.c.bf16 %v1990_v34, %v1983_v48 }
 0x235   : > { %v7128_v22 = vpop.eup %7127  ;;  %v6778_v0 = vadd.f32 %v5513_v31, %v8450_v17  ;;  %v1650_v51 = vpop.f32.mrb[11].mxu0  ;;  %v1807_v42 = vsub.f32 %v8487_v62, %v9421_v11  ;;  %v8507_v20 = vsub.f32 %v7126_v25, %v8493_v7 }
 0x236   : > { %v7130_v50 = vpop.eup %7129  ;;  %v8509_v16 = vand.u32 4294901760, %v7128_v22  ;;  %v6779_v59 = vadd.f32 %v8450_v17, %v1650_v51  ;;  %v9424_v14 = vand.u32 4294901760, %v8500_v15  ;;  %v1818_v11 = vand.u32 4294901760, %v1817_v52 }
 0x237   : > { %v8513_v13 = vand.u32 4294901760, %v7130_v50  ;;  %7139 = vtanh.f32 %v6778_v0  ;;  %v1808_v31 = vand.u32 4294901760, %v1807_v42  ;;  %v9425_v47 = vand.u32 4294901760, %v8507_v20 }
 0x238   : > { %7141 = vtanh.f32 %v6779_v59  ;;  %v5516_v54 = vpop.f32.mrb[12].mxu0  ;;  %v1837_v25 = vsub.f32 %v8500_v15, %v9424_v14  ;;  %v8520_v53 = vsub.f32 %v7128_v22, %v8509_v16 }
 0x239   : > { %v7132_v51 = vpop.eup %7131  ;;  %v6780_v32 = vadd.f32 %v5516_v54, %v8450_v17  ;;  %v1662_v48 = vpop.f32.mrb[13].mxu0  ;;  %5552 = vmatprep.mubr.f32.mxu1 %v1808_v31  ;;  %v1827_v34 = vsub.f32 %v8507_v20, %v9425_v47  ;;  %v8527_v59 = vsub.f32 %v7130_v50, %v8513_v13 }
 0x23a   : > { %v7134_v52 = vpop.eup %7133  ;;  %v8529_v0 = vand.u32 4294901760, %v7132_v51  ;;  %v6781_v42 = vadd.f32 %v8450_v17, %v1662_v48  ;;  %5553 = vmatmul.mubr.f32.vlgmr.msra.gmra.mrb[0].mxu1 %v1818_v11  ;;  %v9428_v22 = vand.u32 4294901760, %v8520_v53  ;;  %v1838_v50 = vand.u32 4294901760, %v1837_v25 }
 0x23b   : > { %v8533_v14 = vand.u32 4294901760, %v7134_v52  ;;  %7143 = vtanh.f32 %v6780_v32  ;;  %6419 = vmatpush3.bf16.msra.mxu1 %v8332_v37  ;;  %v1828_v54 = vand.u32 4294901760, %v1827_v34  ;;  %v9430_v31 = vand.u32 4294901760, %v8527_v59 }
 0x23c   : > { %7145 = vtanh.f32 %v6781_v42  ;;  %v5519_v47 = vpop.f32.mrb[14].mxu0  ;;  %6421 = vmatprep.subr.bf16.mxu1 %v6420_v9  ;;  %v1857_v45 = vsub.f32 %v8520_v53, %v9428_v22  ;;  %v8541_v11 = vsub.f32 %v7132_v51, %v8529_v0 }
 0x23d   : > { %v7136_v48 = vpop.eup %7135  ;;  %v6782_v46 = vadd.f32 %v5519_v47, %v8450_v17  ;;  %v1674_v32 = vpop.f32.mrb[15].mxu0  ;;  %5555 = vmatprep.mubr.f32.mxu1 %v1828_v54  ;;  %v1847_v37 = vsub.f32 %v8527_v59, %v9430_v31  ;;  %v8548_v34 = vsub.f32 %v7134_v52, %v8533_v14 }
 0x23e   : > { %v7138_v25 = vpop.eup %7137  ;;  %v8550_v42 = vand.u32 4294901760, %v7136_v48  ;;  %v6783_v22 = vadd.f32 %v8450_v17, %v1674_v32  ;;  %5556 = vmatmul.mubr.f32.gmra.mrb[2].mxu1 %v1838_v50  ;;  %v9431_v51 = vand.u32 4294901760, %v8541_v11  ;;  %v1858_v31 = vand.u32 4294901760, %v1857_v45 }
 0x23f   : > { %v8554_v57 = vand.u32 4294901760, %v7138_v25  ;;  %7147 = vtanh.f32 %v6782_v46  ;;  %6423 = vmatpush3.bf16.msra.mxu1 %v6420_v9  ;;  %v1848_v47 = vand.u32 4294901760, %v1847_v37  ;;  %v9432_v54 = vand.u32 4294901760, %v8548_v34 }
 0x240   : > { %7149 = vtanh.f32 %v6783_v22  ;;  %6425 = vmatprep.subr.bf16.mxu1 %v8353_v27  ;;  %v1877_v52 = vsub.f32 %v8541_v11, %v9431_v51  ;;  %v8562_v17 = vsub.f32 %v7136_v48, %v8550_v42 }
 0x241   : > { %v7140_v50 = vpop.eup %7139  ;;  %5558 = vmatprep.mubr.f32.mxu1 %v1848_v47  ;;  %v1867_v46 = vsub.f32 %v8548_v34, %v9432_v54  ;;  %v8568_v9 = vsub.f32 %v7138_v25, %v8554_v57 }
 0x242   : > { %v7142_v22 = vpop.eup %7141  ;;  %v8570_v45 = vand.u32 4294901760, %v7140_v50  ;;  %5559 = vmatmul.mubr.f32.gmra.mrb[4].mxu1 %v1858_v31  ;;  %v9436_v32 = vand.u32 4294901760, %v8562_v17  ;;  %v1878_v51 = vand.u32 4294901760, %v1877_v52 }
 0x243   : > { %v8573_v37 = vand.u32 4294901760, %v7142_v22  ;;  %6427 = vmatpush3.bf16.msra.mxu1 %v8353_v27  ;;  %v1868_v48 = vand.u32 4294901760, %v1867_v46  ;;  %v9437_v47 = vand.u32 4294901760, %v8568_v9 }
 0x244   : > { %6429 = vmatprep.subr.bf16.mxu1 %v8367_v38  ;;  %v1897_v25 = vsub.f32 %v8562_v17, %v9436_v32  ;;  %v8582_v54 = vsub.f32 %v7140_v50, %v8570_v45 }
 0x245   : > { %v7144_v31 = vpop.eup %7143  ;;  %5561 = vmatprep.mubr.f32.mxu1 %v1868_v48  ;;  %v1887_v29 = vsub.f32 %v8568_v9, %v9437_v47  ;;  %v8588_v27 = vsub.f32 %v7142_v22, %v8573_v37 }
 0x246   : > { %v7146_v46 = vpop.eup %7145  ;;  %v8590_v52 = vand.u32 4294901760, %v7144_v31  ;;  %5562 = vmatmul.mubr.f32.gmra.mrb[6].mxu1 %v1878_v51  ;;  %v9441_v23 = vand.u32 4294901760, %v8582_v54  ;;  %v1898_v32 = vand.u32 4294901760, %v1897_v25 }
 0x247   : > { %v8593_v49 = vand.u32 4294901760, %v7146_v46  ;;  %6431 = vmatpush3.bf16.msra.mxu1 %v8367_v38  ;;  %v1888_v50 = vand.u32 4294901760, %v1887_v29  ;;  %v9442_v48 = vand.u32 4294901760, %v8588_v27 }
 0x248   : > { %6433 = vmatprep.subr.bf16.mxu1 %v8391_v6  ;;  %v1917_v22 = vsub.f32 %v8582_v54, %v9441_v23  ;;  %v8602_v47 = vsub.f32 %v7144_v31, %v8590_v52 }
 0x249   : > { %v7148_v51 = vpop.eup %7147  ;;  %5564 = vmatprep.mubr.f32.mxu1 %v1888_v50  ;;  %v1907_v40 = vsub.f32 %v8588_v27, %v9442_v48  ;;  %v8608_v29 = vsub.f32 %v7146_v46, %v8593_v49 }
 0x24a   : > { %v7150_v38 = vpop.eup %7149  ;;  %v8610_v25 = vand.u32 4294901760, %v7148_v51  ;;  %5565 = vmatmul.mubr.f32.gmra.mrb[8].mxu1 %v1898_v32  ;;  %v9444_v2 = vand.u32 4294901760, %v8602_v47  ;;  %v1918_v23 = vand.u32 4294901760, %v1917_v22 }
 0x24b   : > { %v8613_v55 = vand.u32 4294901760, %v7150_v38  ;;  %6435 = vmatpush3.bf16.msra.mxu1 %v8391_v6  ;;  %v1908_v31 = vand.u32 4294901760, %v1907_v40  ;;  %v1926_v50 = vand.u32 4294901760, %v8608_v29 }
 0x24c   : > { %6437 = vmatprep.subr.bf16.mxu1 %v8395_v33  ;;  %v1937_v46 = vsub.f32 %v8602_v47, %v9444_v2  ;;  %v8622_v48 = vsub.f32 %v7148_v51, %v8610_v25 }
 0x24d   : > { %5567 = vmatprep.mubr.f32.mxu1 %v1908_v31  ;;  %v1927_v32 = vsub.f32 %v8608_v29, %v1926_v50  ;;  %v8628_v6 = vsub.f32 %v7150_v38, %v8613_v55  ;;  %v6452_v31 = vpack.c.bf16 %v8464_v26, %v8458_v24 }
 0x24e   : > { %5568 = vmatmul.mubr.f32.gmra.mrb[10].mxu1 %v1918_v23  ;;  %v1956_v40 = vand.u32 4294901760, %v8622_v48  ;;  %v1938_v2 = vand.u32 4294901760, %v1937_v46 }
 0x24f   : > { %6439 = vmatpush3.bf16.msra.mxu1 %v8395_v33  ;;  %v1928_v22 = vand.u32 4294901760, %v1927_v32  ;;  %v1946_v36 = vand.u32 4294901760, %v8628_v6  ;;  %v9572_v32 = vld [vmem:[#allocation21_spill] sm:$0xff] }
 0x250   : > { %6441 = vmatprep.subr.bf16.mxu1 %v8409_v63  ;;  %v1957_v51 = vsub.f32 %v8622_v48, %v1956_v40 }
 0x251   : > { %5570 = vmatprep.mubr.f32.mxu1 %v1928_v22  ;;  %v1947_v38 = vsub.f32 %v8628_v6, %v1946_v36  ;;  %v9573_v22 = vand.u32 4294901760, %v9572_v32 }
 0x252   : > { %5571 = vmatmul.mubr.f32.gmra.mrb[12].mxu1 %v1938_v2  ;;  %v1958_v33 = vand.u32 4294901760, %v1957_v51  ;;  %v9562_v2 = vand.u32 4294901760, %v8311_v30  ;;  %v9569_v30 = vand.u32 4294901760, %v8507_v20  ;;  %v9574_v51 = vand.u32 4294901760, %v8500_v15 }
 0x253   : > { %6443 = vmatpush3.bf16.msra.mxu1 %v8409_v63  ;;  %v1948_v23 = vand.u32 4294901760, %v1947_v38  ;;  %v9563_v63 = vld [vmem:[#allocation19_spill] sm:$0xff]  ;;  %v9578_v38 = vld [vmem:[#allocation17_spill] sm:$0xff] }
 0x254   : > { %6445 = vmatprep.subr.bf16.mxu1 %v8417_v12 }
 0x255   : > { %5573 = vmatprep.mubr.f32.mxu1 %v1948_v23 }
 0x256   : > { %5574 = vmatmul.mubr.f32.gmra.mrb[14].mxu1 %v1958_v33  ;;  %v9580_v33 = vand.u32 4294901760, %v8520_v53 }
 0x257   : > { %6447 = vmatpush3.bf16.msra.mxu1 %v8417_v12  ;;  %5608 = vmatprep.mubr.f32.mxu1 %v8480_v3  ;;  %v9564_v12 = vand.u32 4294901760, %v9563_v63  ;;  %v9584_v63 = vld [vmem:[#allocation26_spill] sm:$0xff] }
 0x258   : > { %6449 = vmatprep.subr.bf16.mxu1 %v8421_v10 }
 0x25a   : > { %5609 = vmatmul.mubr.f32.vlgmr.msra.gmra.mrb[0].mxu1 %v8474_v43 }
 0x25b   : > { %5611 = vmatprep.mubr.f32.mxu1 %v8493_v7  ;;  %6451 = vmatpush3.bf16.msra.mxu1 %v8421_v10  ;;  %v6512_v10 = vpack.c.bf16 %v9564_v12, %v9562_v2 }
 0x25c   : > { %6453 = vmatprep.subr.bf16.mxu1 %v6452_v31 }
 0x25e   : > { %5612 = vmatmul.mubr.f32.gmra.mrb[2].mxu1 %v8489_v18 }
 0x25f   : > { %5614 = vmatprep.mubr.f32.mxu1 %v8513_v13  ;;  %6455 = vmatpush3.bf16.msra.mxu1 %v6452_v31  ;;  %v9581_v31 = vand.u32 4294901760, %v8548_v34 }
 0x260   : > { %6457 = vmatprep.subr.bf16.mxu1 %v8425_v39 }
 0x262   : > { %5615 = vmatmul.mubr.f32.gmra.mrb[4].mxu1 %v8509_v16 }
 0x263   : > { %5617 = vmatprep.mubr.f32.mxu1 %v8533_v14  ;;  %6459 = vmatpush3.bf16.msra.mxu1 %v8425_v39  ;;  %v9565_v39 = vand.u32 4294901760, %v8487_v62 }
 0x264   : > { %6461 = vmatprep.subr.bf16.mxu1 %v8429_v60 }
 0x266   : > { %5618 = vmatmul.mubr.f32.gmra.mrb[6].mxu1 %v8529_v0 }
 0x267   : > { %5620 = vmatprep.mubr.f32.mxu1 %v8554_v57  ;;  %6463 = vmatpush3.bf16.msra.mxu1 %v8429_v60  ;;  %v9566_v60 = vand.u32 4294901760, %v8458_v24  ;;  %v9575_v24 = vand.u32 4294901760, %v8527_v59 }
 0x268   : > { %6465 = vmatprep.subr.bf16.mxu1 %v8433_v61 }
 0x26a   : > { %5621 = vmatmul.mubr.f32.gmra.mrb[8].mxu1 %v8550_v42 }
 0x26b   : > { %5623 = vmatprep.mubr.f32.mxu1 %v8573_v37  ;;  %6467 = vmatpush3.bf16.msra.mxu1 %v8433_v61  ;;  %v9567_v61 = vand.u32 4294901760, %v8464_v26  ;;  %v9576_v26 = vld [vmem:[#allocation23_spill] sm:$0xff] }
 0x26c   : > { %6469 = vmatprep.subr.bf16.mxu1 %v8437_v44 }
 0x26e   : > { %5624 = vmatmul.mubr.f32.gmra.mrb[10].mxu1 %v8570_v45 }
 0x26f   : > { %5626 = vmatprep.mubr.f32.mxu1 %v8593_v49  ;;  %6471 = vmatpush3.bf16.msra.mxu1 %v8437_v44  ;;  %v6516_v44 = vpack.c.bf16 %v9567_v61, %v9566_v60  ;;  %v9590_v61 = vld [vmem:[#allocation27_spill] sm:$0xff] }
 0x270   : > { %6473 = vmatprep.subr.bf16.mxu1 %v8441_v4 }
 0x272   : > { %5627 = vmatmul.mubr.f32.gmra.mrb[12].mxu1 %v8590_v52 }
 0x273   : > { %5629 = vmatprep.mubr.f32.mxu1 %v8613_v55  ;;  %6475 = vmatpush3.bf16.msra.mxu1 %v8441_v4  ;;  %v9568_v4 = vand.u32 4294901760, %v8483_v58 }
 0x274   : > { %6477 = vmatprep.subr.bf16.mxu1 %v8445_v21 }
 0x276   : > { %5630 = vmatmul.mubr.f32.gmra.mrb[14].mxu1 %v8610_v25 }
 0x277   : > { %6479 = vmatpush3.bf16.msra.mxu1 %v8445_v21  ;;  %5664 = vmatprep.mubr.f32.mxu1 %v8487_v62  ;;  %v9570_v21 = vld [vmem:[#allocation16_spill] sm:$0xff] }
 0x278   : > { %6481 = vmatprep.subr.bf16.mxu1 %v8152_v5  ;;  %v9571_v46 = vand.u32 4294901760, %v9570_v21 }
 0x27a   : > { %5665 = vmatmul.mubr.f32.vlgmr.msra.gmra.mrb[0].mxu1 %v8483_v58  ;;  %v6520_v62 = vpack.c.bf16 %v9573_v22, %v9571_v46  ;;  %v9577_v58 = vand.u32 4294901760, %v9576_v26  ;;  %v9596_v46 = vld [vmem:[#allocation20_spill] sm:$0xff]  ;;  %v9598_v22 = vand.u32 4294901760, %v8582_v54  ;;  %v9603_v26 = vand.u32 4294901760, %v8602_v47 }
 0x27b   : > { %5667 = vmatprep.mubr.f32.mxu1 %v8507_v20  ;;  %6483 = vmatpush3.bf16.msra.mxu1 %v8152_v5  ;;  %v9579_v20 = vand.u32 4294901760, %v9578_v38 }
 0x27c   : > { %6485 = vmatprep.subr.bf16.mxu1 %v8159_v1 }
 0x27d   : > { %v6524_v23 = vpack.c.bf16 %v9579_v20, %v9577_v58 }
 0x27e   : > { %5668 = vmatmul.mubr.f32.gmra.mrb[2].mxu1 %v8500_v15  ;;  %v9582_v15 = vld [vmem:[#allocation24_spill] sm:$0xff] }
 0x27f   : > { %5670 = vmatprep.mubr.f32.mxu1 %v8527_v59  ;;  %6487 = vmatpush3.bf16.msra.mxu1 %v8159_v1  ;;  %v9583_v2 = vand.u32 4294901760, %v9582_v15  ;;  %v9585_v59 = vand.u32 4294901760, %v9584_v63 }
 0x280   : > { %6489 = vmatprep.subr.bf16.mxu1 %v8290_v56 }
 0x281   : > { %v6528_v12 = vpack.c.bf16 %v9585_v59, %v9583_v2 }
 0x282   : > { %5671 = vmatmul.mubr.f32.gmra.mrb[4].mxu1 %v8520_v53  ;;  %v9588_v53 = vld [vmem:[#allocation18_spill] sm:$0xff] }
 0x283   : > { %5673 = vmatprep.mubr.f32.mxu1 %v8548_v34  ;;  %6491 = vmatpush3.bf16.msra.mxu1 %v8290_v56  ;;  %v9589_v60 = vand.u32 4294901760, %v9588_v53  ;;  %v9591_v34 = vand.u32 4294901760, %v9590_v61 }
 0x284   : > { %6493 = vmatprep.subr.bf16.mxu1 %v8294_v19 }
 0x286   : > { %5674 = vmatmul.mubr.f32.gmra.mrb[6].mxu1 %v8541_v11 }
 0x287   : > { %5676 = vmatprep.mubr.f32.mxu1 %v8568_v9  ;;  %6495 = vmatpush3.bf16.msra.mxu1 %v8294_v19 }
 0x288   : > { %6497 = vmatprep.subr.bf16.mxu1 %v8298_v28 }
 0x28a   : > { %5677 = vmatmul.mubr.f32.gmra.mrb[8].mxu1 %v8562_v17 }
 0x28b   : > { %5679 = vmatprep.mubr.f32.mxu1 %v8588_v27  ;;  %6499 = vmatpush3.bf16.msra.mxu1 %v8298_v28 }
 0x28c   : > { %6501 = vmatprep.subr.bf16.mxu1 %v8302_v41 }
 0x28e   : > { %5680 = vmatmul.mubr.f32.gmra.mrb[10].mxu1 %v8582_v54 }
 0x28f   : > { %5682 = vmatprep.mubr.f32.mxu1 %v8608_v29  ;;  %6503 = vmatpush3.bf16.msra.mxu1 %v8302_v41 }
 0x290   : > { %6505 = vmatprep.subr.bf16.mxu1 %v8306_v35 }
 0x292   : > { %5683 = vmatmul.mubr.f32.gmra.mrb[12].mxu1 %v8602_v47 }
 0x293   : > { %5685 = vmatprep.mubr.f32.mxu1 %v8628_v6  ;;  %6507 = vmatpush3.bf16.msra.mxu1 %v8306_v35 }
 0x294   : > { %6509 = vmatprep.subr.bf16.mxu1 %v8322_v8 }
 0x296   : > { %5686 = vmatmul.mubr.f32.gmra.mrb[14].mxu1 %v8622_v48 }
 0x297   : > { %6511 = vmatpush3.bf16.msra.mxu1 %v8322_v8  ;;  %5720 = vmatprep.mubr.f32.mxu1 %v9565_v39  ;;  %v9587_v39 = vand.u32 4294901760, %v8568_v9  ;;  %v9597_v9 = vand.u32 4294901760, %v9596_v46 }
 0x298   : > { %6513 = vmatprep.subr.bf16.mxu1 %v6512_v10 }
 0x29a   : > { %5721 = vmatmul.mubr.f32.vlgmr.msra.gmra.mrb[0].mxu1 %v9568_v4  ;;  %v9592_v4 = vand.u32 4294901760, %v8562_v17  ;;  %v9599_v17 = vld [vmem:[#allocation31_spill] sm:$0xff] }
 0x29b   : > { %5723 = vmatprep.mubr.f32.mxu1 %v9569_v30  ;;  %6515 = vmatpush3.bf16.msra.mxu1 %v6512_v10  ;;  %v9586_v10 = vand.u32 4294901760, %v8541_v11  ;;  %v9593_v30 = vand.u32 4294901760, %v8588_v27  ;;  %v9594_v11 = vld [vmem:[#allocation30_spill] sm:$0xff] }
 0x29c   : > { %6517 = vmatprep.subr.bf16.mxu1 %v6516_v44  ;;  %v9595_v21 = vand.u32 4294901760, %v9594_v11 }
 0x29e   : > { %5724 = vmatmul.mubr.f32.gmra.mrb[2].mxu1 %v9574_v51  ;;  %v6536_v32 = vpack.c.bf16 %v9597_v9, %v9595_v21  ;;  %v9601_v51 = vld [vmem:[#allocation32_spill] sm:$0xff] }
 0x29f   : > { %5726 = vmatprep.mubr.f32.mxu1 %v9575_v24  ;;  %6519 = vmatpush3.bf16.msra.mxu1 %v6516_v44  ;;  %v6532_v44 = vpack.c.bf16 %v9591_v34, %v9589_v60  ;;  %v9602_v27 = vand.u32 4294901760, %v9601_v51 }
 0x2a0   : > { %6521 = vmatprep.subr.bf16.mxu1 %v6520_v62 }
 0x2a2   : > { %5727 = vmatmul.mubr.f32.gmra.mrb[4].mxu1 %v9580_v33 }
 0x2a3   : > { %5729 = vmatprep.mubr.f32.mxu1 %v9581_v31  ;;  %6523 = vmatpush3.bf16.msra.mxu1 %v6520_v62  ;;  %v9600_v62 = vand.u32 4294901760, %v9599_v17 }
 0x2a4   : > { %6525 = vmatprep.subr.bf16.mxu1 %v6524_v23 }
 0x2a5   : > { %v6540_v24 = vpack.c.bf16 %v9602_v27, %v9600_v62 }
 0x2a6   : > { %5730 = vmatmul.mubr.f32.gmra.mrb[6].mxu1 %v9586_v10 }
 0x2a7   : > { %5732 = vmatprep.mubr.f32.mxu1 %v9587_v39  ;;  %6527 = vmatpush3.bf16.msra.mxu1 %v6524_v23 }
 0x2a8   : > { %6529 = vmatprep.subr.bf16.mxu1 %v6528_v12 }
 0x2aa   : > { %5733 = vmatmul.mubr.f32.gmra.mrb[8].mxu1 %v9592_v4 }
 0x2ab   : > { %5735 = vmatprep.mubr.f32.mxu1 %v9593_v30  ;;  %6531 = vmatpush3.bf16.msra.mxu1 %v6528_v12 }
 0x2ac   : > { %6533 = vmatprep.subr.bf16.mxu1 %v6532_v44 }
 0x2ae   : > { %5736 = vmatmul.mubr.f32.gmra.mrb[10].mxu1 %v9598_v22 }
 0x2af   : > { %5738 = vmatprep.mubr.f32.mxu1 %v1926_v50  ;;  %6535 = vmatpush3.bf16.msra.mxu1 %v6532_v44 }
 0x2b0   : > { %6537 = vmatprep.subr.bf16.mxu1 %v6536_v32 }
 0x2b2   : > { %5739 = vmatmul.mubr.f32.gmra.mrb[12].mxu1 %v9603_v26 }
 0x2b3   : > { %5741 = vmatprep.mubr.f32.mxu1 %v1946_v36  ;;  %6539 = vmatpush3.bf16.msra.mxu1 %v6536_v32 }
 0x2b4   : > { %6541 = vmatprep.subr.bf16.mxu1 %v6540_v24 }
 0x2b6   : > { %5742 = vmatmul.mubr.f32.gmra.mrb[14].mxu1 %v1956_v40 }
 0x2b7   : > { %6543 = vmatpush3.bf16.msra.mxu1 %v6540_v24  ;;  %5776 = vmatprep.mubr.f32.mxu1 %v8480_v3 }
 0x2b8   : > { %6545 = vmatprep.subr.bf16.mxu1 %v8152_v5 }
 0x2ba   : > { %5777 = vmatmul.mubr.f32.vlgmr.msra.gmra.mrb[0].mxu1 %v8474_v43 }
 0x2bb   : > { %5779 = vmatprep.mubr.f32.mxu1 %v8493_v7  ;;  %6547 = vmatpush3.bf16.msra.mxu1 %v8152_v5  ;;  %v8822_v5 = vld [vmem:[%s9334_s4] ss:$0 sm:$0xff] }
 0x2bc   : > { %6549 = vmatprep.subr.bf16.mxu1 %v8159_v1 }
 0x2be   : > { %5780 = vmatmul.mubr.f32.gmra.mrb[2].mxu1 %v8489_v18 }
 0x2bf   : > { %5782 = vmatprep.mubr.f32.mxu1 %v8513_v13  ;;  %6551 = vmatpush3.bf16.msra.mxu1 %v8159_v1 }
 0x2c0   : > { %6553 = vmatprep.subr.bf16.mxu1 %v8290_v56 }
 0x2c2   : > { %5783 = vmatmul.mubr.f32.gmra.mrb[4].mxu1 %v8509_v16 }
 0x2c3   : > { %5785 = vmatprep.mubr.f32.mxu1 %v8533_v14  ;;  %6555 = vmatpush3.bf16.msra.mxu1 %v8290_v56 }
 0x2c4   : > { %6557 = vmatprep.subr.bf16.mxu1 %v8294_v19 }
 0x2c6   : > { %5786 = vmatmul.mubr.f32.gmra.mrb[6].mxu1 %v8529_v0 }
 0x2c7   : > { %5788 = vmatprep.mubr.f32.mxu1 %v8554_v57  ;;  %6559 = vmatpush3.bf16.msra.mxu1 %v8294_v19 }
 0x2c8   : > { %6561 = vmatprep.subr.bf16.mxu1 %v8298_v28 }
 0x2ca   : > { %5789 = vmatmul.mubr.f32.gmra.mrb[8].mxu1 %v8550_v42 }
 0x2cb   : > { %5791 = vmatprep.mubr.f32.mxu1 %v8573_v37  ;;  %6563 = vmatpush3.bf16.msra.mxu1 %v8298_v28 }
 0x2cc   : > { %6565 = vmatprep.subr.bf16.mxu1 %v8302_v41 }
 0x2ce   : > { %5792 = vmatmul.mubr.f32.gmra.mrb[10].mxu1 %v8570_v45 }
 0x2cf   : > { %5794 = vmatprep.mubr.f32.mxu1 %v8593_v49  ;;  %6567 = vmatpush3.bf16.msra.mxu1 %v8302_v41 }
 0x2d0   : > { %6569 = vmatprep.subr.bf16.mxu1 %v8306_v35 }
 0x2d2   : > { %5795 = vmatmul.mubr.f32.gmra.mrb[12].mxu1 %v8590_v52 }
 0x2d3   : > { %5797 = vmatprep.mubr.f32.mxu1 %v8613_v55  ;;  %6571 = vmatpush3.bf16.msra.mxu1 %v8306_v35 }
 0x2d4   : > { %6573 = vmatprep.subr.bf16.mxu1 %v8322_v8 }
 0x2d6   : > { %5798 = vmatmul.mubr.f32.gmra.mrb[14].mxu1 %v8610_v25 }
 0x2d7   : > { %6575 = vmatpush3.bf16.msra.mxu1 %v8322_v8  ;;  %5832 = vmatprep.mubr.f32.mxu1 %v8480_v3 }
 0x2da   : > { %5833 = vmatmul.mubr.f32.vlgmr.msra.gmra.mrb[0].mxu1 %v8474_v43 }
 0x2db   : > { %5835 = vmatprep.mubr.f32.mxu1 %v8493_v7 }
 0x2de   : > { %5836 = vmatmul.mubr.f32.gmra.mrb[2].mxu1 %v8489_v18 }
 0x2df   : > { %5838 = vmatprep.mubr.f32.mxu1 %v8513_v13 }
 0x2e2   : > { %5839 = vmatmul.mubr.f32.gmra.mrb[4].mxu1 %v8509_v16 }
 0x2e3   : > { %5841 = vmatprep.mubr.f32.mxu1 %v8533_v14 }
 0x2e6   : > { %5842 = vmatmul.mubr.f32.gmra.mrb[6].mxu1 %v8529_v0 }
 0x2e7   : > { %5844 = vmatprep.mubr.f32.mxu1 %v8554_v57 }
 0x2ea   : > { %5845 = vmatmul.mubr.f32.gmra.mrb[8].mxu1 %v8550_v42 }
 0x2eb   : > { %5847 = vmatprep.mubr.f32.mxu1 %v8573_v37 }
 0x2ee   : > { %5848 = vmatmul.mubr.f32.gmra.mrb[10].mxu1 %v8570_v45 }
 0x2ef   : > { %5850 = vmatprep.mubr.f32.mxu1 %v8593_v49 }
 0x2f2   : > { %5851 = vmatmul.mubr.f32.gmra.mrb[12].mxu1 %v8590_v52 }
 0x2f3   : > { %5853 = vmatprep.mubr.f32.mxu1 %v8613_v55 }
 0x2f6   : > { %5854 = vmatmul.mubr.f32.gmra.mrb[14].mxu1 %v8610_v25 }
 0x3ad   : > { %v5834_v1 = vpop.f32.mrb[0].mxu1 }
 0x3ae   : > { %v2915_v56 = vpop.f32.mrb[1].mxu1  ;;  %v6784_v19 = vadd.f32 %v5834_v1, %v8822_v5 }
 0x3af   : > { %v6785_v28 = vadd.f32 %v8822_v5, %v2915_v56 }
 0x3b1   : > { %7151 = vtanh.f32 %v6785_v28  ;;  %v5837_v41 = vpop.f32.mrb[2].mxu1 }
 0x3b2   : > { %v2927_v35 = vpop.f32.mrb[3].mxu1  ;;  %7153 = vtanh.f32 %v6784_v19  ;;  %v6786_v36 = vadd.f32 %v5837_v41, %v8822_v5 }
 0x3b3   : > { %v6787_v13 = vadd.f32 %v8822_v5, %v2927_v35 }
 0x3b5   : > { %7155 = vtanh.f32 %v6787_v13  ;;  %v5840_v8 = vpop.f32.mrb[4].mxu1 }
 0x3b6   : > { %v2939_v55 = vpop.f32.mrb[5].mxu1  ;;  %7157 = vtanh.f32 %v6786_v36  ;;  %v6788_v49 = vadd.f32 %v5840_v8, %v8822_v5 }
 0x3b7   : > { %v6789_v7 = vadd.f32 %v8822_v5, %v2939_v55 }
 0x3b9   : > { %7159 = vtanh.f32 %v6789_v7  ;;  %v5843_v18 = vpop.f32.mrb[6].mxu1 }
 0x3ba   : > { %v2951_v57 = vpop.f32.mrb[7].mxu1  ;;  %7161 = vtanh.f32 %v6788_v49  ;;  %v6790_v43 = vadd.f32 %v5843_v18, %v8822_v5 }
 0x3bb   : > { %v8830_v16 = vpop.eup %7151  ;;  %v6791_v3 = vadd.f32 %v8822_v5, %v2951_v57 }
 0x3bc   : > { %v3025_v14 = vmul.f32 %v8830_v16, %v8830_v16  ;;  %v8836_v0 = vpop.eup %7153 }
 0x3bd   : > { %7163 = vtanh.f32 %v6791_v3  ;;  %v5846_v42 = vpop.f32.mrb[8].mxu1  ;;  %v3026_v48 = vmul.f32 %v8836_v0, %v8836_v0 }
 0x3be   : > { %v2963_v54 = vpop.f32.mrb[9].mxu1  ;;  %3041 = vadd.xlane.f32.xlu0 %v3025_v14  ;;  %7165 = vtanh.f32 %v6790_v43  ;;  %v6792_v37 = vadd.f32 %v5846_v42, %v8822_v5 }
 0x3bf   : > { %v8838_v45 = vpop.eup %7155  ;;  %v6793_v47 = vadd.f32 %v8822_v5, %v2963_v54 }
 0x3c0   : > { %v3027_v52 = vmul.f32 %v8838_v45, %v8838_v45  ;;  %v8846_v29 = vpop.eup %7157 }
 0x3c1   : > { %7167 = vtanh.f32 %v6793_v47  ;;  %v5849_v25 = vpop.f32.mrb[10].mxu1  ;;  %v3028_v38 = vmul.f32 %v8846_v29, %v8846_v29 }
 0x3c2   : > { %v2975_v50 = vpop.f32.mrb[11].mxu1  ;;  %3045 = vadd.xlane.f32.xlu1 %v3027_v52  ;;  %3043 = vadd.xlane.f32.xlu0 %v3026_v48  ;;  %7169 = vtanh.f32 %v6792_v37  ;;  %v6794_v40 = vadd.f32 %v5849_v25, %v8822_v5 }
 0x3c3   : > { %v8848_v6 = vpop.eup %7159  ;;  %v6795_v58 = vadd.f32 %v8822_v5, %v2975_v50 }
 0x3c4   : > { %v3029_v20 = vmul.f32 %v8848_v6, %v8848_v6  ;;  %v8856_v23 = vpop.eup %7161 }
 0x3c5   : > { %7171 = vtanh.f32 %v6795_v58  ;;  %v5852_v33 = vpop.f32.mrb[12].mxu1  ;;  %v3030_v59 = vmul.f32 %v8856_v23, %v8856_v23 }
 0x3c6   : > { %v2987_v31 = vpop.f32.mrb[13].mxu1  ;;  %3047 = vadd.xlane.f32.xlu1 %v3028_v38  ;;  %3049 = vadd.xlane.f32.xlu0 %v3029_v20  ;;  %7173 = vtanh.f32 %v6794_v40  ;;  %v6796_v2 = vadd.f32 %v5852_v33, %v8822_v5 }
 0x3c7   : > { %v8858_v15 = vpop.eup %7163  ;;  %v6797_v63 = vadd.f32 %v8822_v5, %v2987_v31 }
 0x3c8   : > { %v3031_v12 = vmul.f32 %v8858_v15, %v8858_v15  ;;  %v8866_v10 = vpop.eup %7165 }
 0x3c9   : > { %7175 = vtanh.f32 %v6797_v63  ;;  %v5855_v39 = vpop.f32.mrb[14].mxu1  ;;  %v3032_v44 = vmul.f32 %v8866_v10, %v8866_v10 }
 0x3ca   : > { %v2999_v53 = vpop.f32.mrb[15].mxu1  ;;  %3051 = vadd.xlane.f32.xlu1 %v3030_v59  ;;  %3053 = vadd.xlane.f32.xlu0 %v3031_v12  ;;  %7177 = vtanh.f32 %v6796_v2  ;;  %v6798_v61 = vadd.f32 %v5855_v39, %v8822_v5 }
 0x3cb   : > { %v8868_v60 = vpop.eup %7167  ;;  %v6799_v34 = vadd.f32 %v8822_v5, %v2999_v53 }
 0x3cc   : > { %v3033_v4 = vmul.f32 %v8868_v60, %v8868_v60  ;;  %v8876_v30 = vpop.eup %7169 }
 0x3cd   : > { %7179 = vtanh.f32 %v6799_v34  ;;  %v3034_v21 = vmul.f32 %v8876_v30, %v8876_v30 }
 0x3ce   : > { %3055 = vadd.xlane.f32.xlu1 %v3032_v44  ;;  %3057 = vadd.xlane.f32.xlu0 %v3033_v4  ;;  %7181 = vtanh.f32 %v6798_v61 }
 0x3cf   : > { %v8878_v11 = vpop.eup %7171 }
 0x3d0   : > { %v3035_v46 = vmul.f32 %v8878_v11, %v8878_v11  ;;  %v8884_v9 = vpop.eup %7173 }
 0x3d1   : > { %v3036_v22 = vmul.f32 %v8884_v9, %v8884_v9 }
 0x3d2   : > { %3059 = vadd.xlane.f32.xlu1 %v3034_v21  ;;  %3061 = vadd.xlane.f32.xlu0 %v3035_v46 }
 0x3d3   : > { %v8886_v32 = vpop.eup %7175 }
 0x3d4   : > { %v3037_v17 = vmul.f32 %v8886_v32, %v8886_v32  ;;  %v8892_v62 = vpop.eup %7177 }
 0x3d5   : > { %v3038_v27 = vmul.f32 %v8892_v62, %v8892_v62 }
 0x3d6   : > { %3063 = vadd.xlane.f32.xlu1 %v3036_v22  ;;  %3065 = vadd.xlane.f32.xlu0 %v3037_v17 }
 0x3d7   : > { %v8894_v51 = vpop.eup %7179 }
 0x3d8   : > { %v3039_v24 = vmul.f32 %v8894_v51, %v8894_v51  ;;  %v8900_v26 = vpop.eup %7181 }
 0x3d9   : > { %v3040_v5 = vmul.f32 %v8900_v26, %v8900_v26 }
 0x3da   : > { %3067 = vadd.xlane.f32.xlu1 %v3038_v27  ;;  %3069 = vadd.xlane.f32.xlu0 %v3039_v24 }
 0x3de   : > { %3071 = vadd.xlane.f32.xlu1 %v3040_v5 }
 0x44b   : > { %v3042_v1 = vpop.xlane.xlu0 %3041 }
 0x44c   : > { %v3073_v56 = vmax.f32 %v3042_v1, 1e-16 }
 0x44e   : > { %7183 = vrsqrt.f32 %v3073_v56 }
 0x44f   : > { %v3046_v19 = vpop.xlane.xlu1 %3045  ;;  %v3044_v28 = vpop.xlane.xlu0 %3043 }
 0x450   : > { %v3075_v41 = vmax.f32 %v3046_v19, 1e-16  ;;  %v3074_v35 = vmax.f32 %v3044_v28, 1e-16 }
 0x452   : > { %7185 = vrsqrt.f32 %v3075_v41 }
 0x453   : > { %7187 = vrsqrt.f32 %v3074_v35  ;;  %v3048_v36 = vpop.xlane.xlu1 %3047  ;;  %v3050_v13 = vpop.xlane.xlu0 %3049 }
 0x454   : > { %v3076_v8 = vmax.f32 %v3048_v36, 1e-16  ;;  %v3077_v55 = vmax.f32 %v3050_v13, 1e-16 }
 0x456   : > { %7189 = vrsqrt.f32 %v3076_v8 }
 0x457   : > { %v3052_v49 = vpop.xlane.xlu1 %3051  ;;  %7191 = vrsqrt.f32 %v3077_v55  ;;  %v3054_v43 = vpop.xlane.xlu0 %3053 }
 0x458   : > { %v7184_v7 = vpop.eup %7183  ;;  %v3078_v18 = vmax.f32 %v3052_v49, 1e-16  ;;  %v3079_v47 = vmax.f32 %v3054_v43, 1e-16 }
 0x459   : > { %v3105_v57 = vmul.f32 %v7184_v7, %v8830_v16 }
 0x45a   : > { %7193 = vrsqrt.f32 %v3078_v18 }
 0x45b   : > { %v8905_v3 = vand.u32 4294901760, %v3105_v57  ;;  %v3056_v14 = vpop.xlane.xlu1 %3055 }
 0x45c   : > { %v7186_v42 = vpop.eup %7185  ;;  %v3080_v54 = vmax.f32 %v3056_v14, 1e-16 }
 0x45d   : > { %v7188_v37 = vpop.eup %7187  ;;  %v8908_v52 = vsub.f32 %v3105_v57, %v8905_v3  ;;  %v8914_v25 = vmul.f32 %v7186_v42, %v8838_v45  ;;  %v3058_v45 = vpop.xlane.xlu0 %3057 }
 0x45e   : > { %v8911_v48 = vmul.f32 %v7188_v37, %v8836_v0  ;;  %7195 = vrsqrt.f32 %v3080_v54  ;;  %v3081_v39 = vmax.f32 %v3058_v45, 1e-16 }
 0x45f   : > { %v8917_v16 = vand.u32 4294901760, %v8908_v52  ;;  %v3060_v58 = vpop.xlane.xlu1 %3059  ;;  %7197 = vrsqrt.f32 %v3079_v47  ;;  %v8933_v31 = vand.u32 4294901760, %v8914_v25 }
 0x460   : > { %v7190_v50 = vpop.eup %7189  ;;  %v8920_v40 = vand.u32 4294901760, %v8911_v48 }
 0x461   : > { %v8923_v38 = vmul.f32 %v7190_v50, %v8846_v29  ;;  %6056 = vmatprep.mubr.f32.mxu0 %v8917_v16  ;;  %v3221_v0 = vsub.f32 %v8908_v52, %v8917_v16  ;;  %v7192_v33 = vpop.eup %7191  ;;  %v3082_v29 = vmax.f32 %v3060_v58, 1e-16  ;;  %v3062_v21 = vpop.xlane.xlu0 %3061 }
 0x462   : > { %v8930_v20 = vpack.c.bf16 %v8920_v40, %v8905_v3  ;;  %v8952_v61 = vmul.f32 %v7192_v33, %v8848_v6  ;;  %v3083_v27 = vmax.f32 %v3062_v21, 1e-16 }
 0x463   : > { %v8936_v2 = vand.u32 4294901760, %v8923_v38  ;;  %v8938_v63 = vand.u32 4294901760, %v3221_v0  ;;  %7199 = vrsqrt.f32 %v3082_v29  ;;  %v3064_v34 = vpop.xlane.xlu1 %3063  ;;  %v9045_v29 = vsub.f32 %v8911_v48, %v8920_v40 }
 0x464   : > { %v7194_v59 = vpop.eup %7193  ;;  %6577 = vmatprep.subr.bf16.mxu1 %v8930_v20  ;;  %6673 = vmatprep.subr.bf16.mxu0 %v8930_v20  ;;  %7201 = vrsqrt.f32 %v3081_v39  ;;  %v8961_v4 = vand.u32 4294901760, %v8952_v61  ;;  %v3084_v6 = vmax.f32 %v3064_v34, 1e-16 }
 0x465   : > { %v8943_v12 = vmul.f32 %v7194_v59, %v8856_v23  ;;  %6579 = vmatpush3.bf16.xpose.msra.mxu1 %v8930_v20  ;;  %6675 = vmatpush3.bf16.xpose.msra.mxu0 %v8930_v20  ;;  %v8949_v53 = vpack.c.bf16 %v8936_v2, %v8933_v31  ;;  %v3066_v19 = vpop.xlane.xlu0 %3065 }
 0x466   : > { %5888 = vmatprep.mubr.f32.mxu1 %v8938_v63  ;;  %7203 = vrsqrt.f32 %v3084_v6  ;;  %v3085_v36 = vmax.f32 %v3066_v19, 1e-16 }
 0x467   : > { %6581 = vmatprep.subr.bf16.mxu1 %v8949_v53  ;;  %6677 = vmatprep.subr.bf16.mxu0 %v8949_v53  ;;  %v8958_v23 = vand.u32 4294901760, %v8943_v12  ;;  %v3068_v5 = vpop.xlane.xlu1 %3067  ;;  %7205 = vrsqrt.f32 %v3083_v27 }
 0x468   : > { %v7196_v44 = vpop.eup %7195  ;;  %v3086_v41 = vmax.f32 %v3068_v5, 1e-16 }
 0x469   : > { %v7198_v46 = vpop.eup %7197  ;;  %v8964_v22 = vmul.f32 %v7196_v44, %v8866_v10  ;;  %v8968_v17 = vpack.c.bf16 %v8958_v23, %v8961_v4  ;;  %v3070_v7 = vpop.xlane.xlu0 %3069 }
 0x46a   : > { %v8973_v24 = vmul.f32 %v7198_v46, %v8858_v15  ;;  %7207 = vrsqrt.f32 %v3086_v41  ;;  %v3087_v14 = vmax.f32 %v3070_v7, 1e-16  ;;  %v9083_v46 = vsub.f32 %v8914_v25, %v8933_v31 }
 0x46b   : > { %v8978_v10 = vand.u32 4294901760, %v8964_v22  ;;  %v3072_v8 = vpop.xlane.xlu1 %3071  ;;  %7209 = vrsqrt.f32 %v3085_v36 }
 0x46c   : > { %v8981_v56 = vand.u32 4294901760, %v8973_v24  ;;  %v3088_v57 = vmax.f32 %v3072_v8, 1e-16  ;;  %v3240_v5 = vand.u32 4294901760, %v9083_v46 }
 0x46d   : > { %6583 = vmatpush3.bf16.xpose.msra.mxu1 %v8949_v53  ;;  %6679 = vmatpush3.bf16.xpose.msra.mxu0 %v8949_v53  ;;  %v7200_v1 = vpop.eup %7199  ;;  %v9109_v8 = vsub.f32 %v8964_v22, %v8978_v10 }
 0x46e   : > { %6585 = vmatprep.subr.bf16.mxu1 %v8968_v17  ;;  %6681 = vmatprep.subr.bf16.mxu0 %v8968_v17  ;;  %v7202_v28 = vpop.eup %7201  ;;  %v8984_v15 = vmul.f32 %v7200_v1, %v8876_v30  ;;  %v8988_v35 = vpack.c.bf16 %v8978_v10, %v8981_v56  ;;  %7211 = vrsqrt.f32 %v3088_v57  ;;  %v3241_v41 = vsub.f32 %v9083_v46, %v3240_v5 }
 0x46f   : > { %v8993_v13 = vmul.f32 %v7202_v28, %v8868_v60  ;;  %7213 = vrsqrt.f32 %v3087_v14  ;;  %v9098_v28 = vsub.f32 %v8943_v12, %v8958_v23  ;;  %v3290_v22 = vand.u32 4294901760, %v9109_v8 }
 0x470   : > { %v8998_v30 = vand.u32 4294901760, %v8984_v15  ;;  %v7204_v55 = vpop.eup %7203 }
 0x471   : > { %v9001_v49 = vand.u32 4294901760, %v8993_v13  ;;  %v7206_v18 = vpop.eup %7205  ;;  %v9004_v60 = vmul.f32 %v7204_v55, %v8884_v9  ;;  %v3270_v36 = vand.u32 4294901760, %v9098_v28  ;;  %v3242_v55 = vand.u32 4294901760, %v3241_v41 }
 0x472   : > { %v9013_v42 = vmul.f32 %v7206_v18, %v8878_v11 }
 0x473   : > { %v9008_v43 = vpack.c.bf16 %v8998_v30, %v9001_v49  ;;  %v9018_v9 = vand.u32 4294901760, %v9004_v60  ;;  %v9117_v18 = vsub.f32 %v8993_v13, %v9001_v49  ;;  %v3271_v14 = vsub.f32 %v9098_v28, %v3270_v36 }
 0x474   : > { %v7208_v54 = vpop.eup %7207  ;;  %v9021_v37 = vand.u32 4294901760, %v9013_v42 }
 0x475   : > { %6587 = vmatpush3.bf16.xpose.msra.mxu1 %v8968_v17  ;;  %6683 = vmatpush3.bf16.xpose.msra.mxu0 %v8968_v17  ;;  %v7210_v47 = vpop.eup %7209  ;;  %v9024_v50 = vmul.f32 %v7208_v54, %v8892_v62  ;;  %v9123_v54 = vsub.f32 %v8984_v15, %v8998_v30  ;;  %v3291_v15 = vsub.f32 %v9109_v8, %v3290_v22 }
 0x476   : > { %6589 = vmatprep.subr.bf16.mxu1 %v8988_v35  ;;  %6685 = vmatprep.subr.bf16.mxu0 %v8988_v35  ;;  %v9028_v11 = vpack.c.bf16 %v9018_v9, %v9021_v37  ;;  %v9033_v58 = vmul.f32 %v7210_v47, %v8886_v32 }
 0x477   : > { %v9038_v0 = vand.u32 4294901760, %v9024_v50 }
 0x478   : > { %v7212_v62 = vpop.eup %7211  ;;  %v9041_v45 = vand.u32 4294901760, %v9033_v58 }
 0x479   : > { %v7214_v33 = vpop.eup %7213  ;;  %v9048_v59 = vmul.f32 %v7212_v62, %v8900_v26  ;;  %v3230_v26 = vand.u32 4294901760, %v9045_v29  ;;  %v9128_v62 = vand.u32 4294901760, %v9117_v18 }
 0x47a   : > { %v9052_v32 = vpack.c.bf16 %v9038_v0, %v9041_v45  ;;  %v9057_v39 = vmul.f32 %v7214_v33, %v8894_v51  ;;  %v9075_v51 = vsub.f32 %v8923_v38, %v8936_v2  ;;  %v9089_v38 = vsub.f32 %v8952_v61, %v8961_v4 }
 0x47b   : > { %v9062_v48 = vand.u32 4294901760, %v9048_v59  ;;  %v3231_v21 = vsub.f32 %v9045_v29, %v3230_v26  ;;  %v6704_v19 = vpack.c.bf16 %v3230_v26, %v8917_v16  ;;  %v9132_v33 = vsub.f32 %v9013_v42, %v9021_v37 }
 0x47c   : > { %v9066_v34 = vand.u32 4294901760, %v9057_v39  ;;  %v3250_v27 = vand.u32 4294901760, %v9075_v51  ;;  %v3260_v61 = vand.u32 4294901760, %v9089_v38 }
 0x47d   : > { %6591 = vmatpush3.bf16.xpose.msra.mxu1 %v8988_v35  ;;  %6687 = vmatpush3.bf16.xpose.msra.mxu0 %v8988_v35  ;;  %v3232_v6 = vand.u32 4294901760, %v3231_v21  ;;  %v3310_v21 = vand.u32 4294901760, %v9123_v54  ;;  %v9143_v42 = vand.u32 4294901760, %v9132_v33 }
 0x47e   : > { %6593 = vmatprep.subr.bf16.mxu1 %v9008_v43  ;;  %6689 = vmatprep.subr.bf16.mxu0 %v9008_v43  ;;  %v9070_v44 = vpack.c.bf16 %v9062_v48, %v9066_v34  ;;  %v3251_v25 = vsub.f32 %v9075_v51, %v3250_v27  ;;  %v3261_v12 = vsub.f32 %v9089_v38, %v3260_v61 }
 0x47f   : > { %v6608_v1 = vpack.c.bf16 %v3232_v6, %v8938_v63  ;;  %v9104_v63 = vsub.f32 %v8973_v24, %v8981_v56  ;;  %v6708_v57 = vpack.c.bf16 %v3250_v27, %v3240_v5  ;;  %v3311_v41 = vsub.f32 %v9123_v54, %v3310_v21 }
 0x480   : > { %9604 = vst [vmem:[#allocation22_spill] sm:$0xff] %v9070_v44  ;;  %v3252_v16 = vand.u32 4294901760, %v3251_v25  ;;  %v3262_v13 = vand.u32 4294901760, %v3261_v12  ;;  %v6712_v25 = vpack.c.bf16 %v3270_v36, %v3260_v61  ;;  %v3321_v12 = vsub.f32 %v9132_v33, %v9143_v42 }
 0x481   : > { %v9113_v7 = vand.u32 4294901760, %v9104_v63 }
 0x482   : > { %v6612_v24 = vpack.c.bf16 %v3252_v16, %v3242_v55 }
 0x483   : > { %v3281_v47 = vsub.f32 %v9104_v63, %v9113_v7 }
 0x485   : > { %6595 = vmatpush3.bf16.xpose.msra.mxu1 %v9008_v43  ;;  %6691 = vmatpush3.bf16.xpose.msra.mxu0 %v9008_v43 }
 0x486   : > { %6597 = vmatprep.subr.bf16.mxu1 %v9028_v11  ;;  %6693 = vmatprep.subr.bf16.mxu0 %v9028_v11 }
 0x48d   : > { %6599 = vmatpush3.bf16.xpose.msra.mxu1 %v9028_v11  ;;  %6695 = vmatpush3.bf16.xpose.msra.mxu0 %v9028_v11 }
 0x48e   : > { %6601 = vmatprep.subr.bf16.mxu1 %v9052_v32  ;;  %6697 = vmatprep.subr.bf16.mxu0 %v9052_v32 }
 0x495   : > { %6603 = vmatpush3.bf16.xpose.msra.mxu1 %v9052_v32  ;;  %6699 = vmatpush3.bf16.xpose.msra.mxu0 %v9052_v32 }
 0x496   : > { %6605 = vmatprep.subr.bf16.mxu1 %v9070_v44  ;;  %6701 = vmatprep.subr.bf16.mxu0 %v9070_v44 }
 0x49d   : > { %6607 = vmatpush3.bf16.xpose.msra.mxu1 %v9070_v44  ;;  %6703 = vmatpush3.bf16.xpose.msra.mxu0 %v9070_v44 }
 0x49e   : > { %6609 = vmatprep.subr.bf16.mxu1 %v6608_v1  ;;  %6705 = vmatprep.subr.bf16.mxu0 %v6704_v19 }
 0x4a4   : > { %5889 = vmatmul.mubr.f32.vlgmr.msra.gmra.mrb[16].mxu1 %v3232_v6  ;;  %6057 = vmatmul.mubr.f32.vlgmr.msra.gmra.mrb[16].mxu0 %v3230_v26  ;;  %v3272_v26 = vand.u32 4294901760, %v3271_v14  ;;  %v9138_v6 = vsub.f32 %v9004_v60, %v9018_v9  ;;  %v3292_v60 = vand.u32 4294901760, %v3291_v15  ;;  %v9168_v14 = vsub.f32 %v9048_v59, %v9062_v48 }
 0x4a5   : > { %5891 = vmatprep.mubr.f32.mxu1 %v3242_v55  ;;  %6611 = vmatpush3.bf16.xpose.msra.mxu1 %v6608_v1  ;;  %v3301_v1 = vsub.f32 %v9117_v18, %v9128_v62  ;;  %v9154_v55 = vsub.f32 %v9024_v50, %v9038_v0  ;;  %v6716_v15 = vpack.c.bf16 %v3290_v22, %v9113_v7 }
 0x4a6   : > { %6059 = vmatprep.mubr.f32.mxu0 %v3240_v5  ;;  %6707 = vmatpush3.bf16.xpose.msra.mxu0 %v6704_v19  ;;  %v3282_v5 = vand.u32 4294901760, %v3281_v47  ;;  %v6616_v19 = vpack.c.bf16 %v3272_v26, %v3262_v13  ;;  %v3370_v59 = vand.u32 4294901760, %v9168_v14 }
 0x4a7   : > { %6613 = vmatprep.subr.bf16.mxu1 %v6612_v24  ;;  %6709 = vmatprep.subr.bf16.mxu0 %v6708_v57 }
 0x4a8   : > { %5892 = vmatmul.mubr.f32.gmra.mrb[18].mxu1 %v3252_v16  ;;  %6060 = vmatmul.mubr.f32.gmra.mrb[18].mxu0 %v3250_v27  ;;  %v9147_v27 = vsub.f32 %v9033_v58, %v9041_v45  ;;  %v3330_v16 = vand.u32 4294901760, %v9138_v6  ;;  %v3302_v58 = vand.u32 4294901760, %v3301_v1 }
 0x4a9   : > { %5894 = vmatprep.mubr.f32.mxu1 %v3262_v13  ;;  %6062 = vmatprep.mubr.f32.mxu0 %v3260_v61  ;;  %v3322_v13 = vand.u32 4294901760, %v3321_v12 }
 0x4aa   : > { %v3340_v61 = vand.u32 4294901760, %v9147_v27  ;;  %v3331_v50 = vsub.f32 %v9138_v6, %v3330_v16 }
 0x4ac   : > { %5895 = vmatmul.mubr.f32.gmra.mrb[20].mxu1 %v3272_v26  ;;  %6063 = vmatmul.mubr.f32.gmra.mrb[20].mxu0 %v3270_v36  ;;  %v9161_v36 = vsub.f32 %v9057_v39, %v9066_v34  ;;  %v3341_v47 = vsub.f32 %v9147_v27, %v3340_v61  ;;  %v6620_v26 = vpack.c.bf16 %v3292_v60, %v3282_v5  ;;  %v3332_v1 = vand.u32 4294901760, %v3331_v50 }
 0x4ad   : > { %5897 = vmatprep.mubr.f32.mxu1 %v3282_v5  ;;  %6615 = vmatpush3.bf16.xpose.msra.mxu1 %v6612_v24  ;;  %v3312_v24 = vand.u32 4294901760, %v3311_v41 }
 0x4ae   : > { %6065 = vmatprep.mubr.f32.mxu0 %v9113_v7  ;;  %6711 = vmatpush3.bf16.xpose.msra.mxu0 %v6708_v57  ;;  %v3350_v57 = vand.u32 4294901760, %v9154_v55  ;;  %v3360_v39 = vand.u32 4294901760, %v9161_v36  ;;  %v3342_v12 = vand.u32 4294901760, %v3341_v47  ;;  %v3371_v7 = vsub.f32 %v9168_v14, %v3370_v59 }
 0x4af   : > { %6617 = vmatprep.subr.bf16.mxu1 %v6616_v19  ;;  %6713 = vmatprep.subr.bf16.mxu0 %v6712_v25  ;;  %v6628_v50 = vpack.c.bf16 %v3332_v1, %v3322_v13 }
 0x4b0   : > { %5898 = vmatmul.mubr.f32.gmra.mrb[22].mxu1 %v3292_v60  ;;  %6066 = vmatmul.mubr.f32.gmra.mrb[22].mxu0 %v3290_v22  ;;  %v3351_v41 = vsub.f32 %v9154_v55, %v3350_v57  ;;  %v3361_v44 = vsub.f32 %v9161_v36, %v3360_v39  ;;  %v3372_v60 = vand.u32 4294901760, %v3371_v7 }
 0x4b1   : > { %5900 = vmatprep.mubr.f32.mxu1 %v3302_v58  ;;  %6068 = vmatprep.mubr.f32.mxu0 %v9128_v62 }
 0x4b2   : > { %v3352_v5 = vand.u32 4294901760, %v3351_v41  ;;  %v3362_v22 = vand.u32 4294901760, %v3361_v44  ;;  %v6724_v44 = vpack.c.bf16 %v3330_v16, %v9143_v42 }
 0x4b4   : > { %5901 = vmatmul.mubr.f32.gmra.mrb[24].mxu1 %v3312_v24  ;;  %6069 = vmatmul.mubr.f32.gmra.mrb[24].mxu0 %v3310_v21 }
 0x4b5   : > { %5903 = vmatprep.mubr.f32.mxu1 %v3322_v13  ;;  %6619 = vmatpush3.bf16.xpose.msra.mxu1 %v6616_v19  ;;  %v6624_v19 = vpack.c.bf16 %v3312_v24, %v3302_v58  ;;  %v6632_v58 = vpack.c.bf16 %v3352_v5, %v3342_v12  ;;  %v6732_v24 = vpack.c.bf16 %v3370_v59, %v3360_v39 }
 0x4b6   : > { %6071 = vmatprep.mubr.f32.mxu0 %v9143_v42  ;;  %6715 = vmatpush3.bf16.xpose.msra.mxu0 %v6712_v25  ;;  %v6720_v25 = vpack.c.bf16 %v3310_v21, %v9128_v62  ;;  %v6728_v62 = vpack.c.bf16 %v3350_v57, %v3340_v61  ;;  %v6636_v21 = vpack.c.bf16 %v3372_v60, %v3362_v22 }
 0x4b7   : > { %6621 = vmatprep.subr.bf16.mxu1 %v6620_v26  ;;  %6717 = vmatprep.subr.bf16.mxu0 %v6716_v15  ;;  %v6640_v13 = vpack.c.bf16 %v9045_v29, %v8908_v52  ;;  %v6644_v42 = vpack.c.bf16 %v9075_v51, %v9083_v46 }
 0x4b8   : > { %5904 = vmatmul.mubr.f32.gmra.mrb[26].mxu1 %v3332_v1  ;;  %6072 = vmatmul.mubr.f32.gmra.mrb[26].mxu0 %v3330_v16  ;;  %v6660_v16 = vpack.c.bf16 %v9138_v6, %v9132_v33 }
 0x4b9   : > { %5906 = vmatprep.mubr.f32.mxu1 %v3342_v12  ;;  %6074 = vmatprep.mubr.f32.mxu0 %v3340_v61 }
 0x4bc   : > { %5907 = vmatmul.mubr.f32.gmra.mrb[28].mxu1 %v3352_v5  ;;  %6075 = vmatmul.mubr.f32.gmra.mrb[28].mxu0 %v3350_v57 }
 0x4bd   : > { %5909 = vmatprep.mubr.f32.mxu1 %v3362_v22  ;;  %6623 = vmatpush3.bf16.xpose.msra.mxu1 %v6620_v26 }
 0x4be   : > { %6077 = vmatprep.mubr.f32.mxu0 %v3360_v39  ;;  %6719 = vmatpush3.bf16.xpose.msra.mxu0 %v6716_v15  ;;  %v3127_v39 = vld [vmem:[#allocation8 + $0x30] sm:$0xff] }
 0x4bf   : > { %6625 = vmatprep.subr.bf16.mxu1 %v6624_v19  ;;  %6721 = vmatprep.subr.bf16.mxu0 %v6720_v25 }
 0x4c0   : > { %5910 = vmatmul.mubr.f32.gmra.mrb[30].mxu1 %v3372_v60  ;;  %6078 = vmatmul.mubr.f32.gmra.mrb[30].mxu0 %v3370_v59  ;;  %v3128_v59 = vld [vmem:[#allocation8 + $0x38] sm:$0xff]  ;;  %v3129_v60 = vld [vmem:[#allocation8 + $0x40] sm:$0xff] }
 0x4c1   : > { %5944 = vmatprep.mubr.f32.mxu1 %v8905_v3  ;;  %6112 = vmatprep.mubr.f32.mxu0 %v8905_v3 }
 0x4c5   : > { %6627 = vmatpush3.bf16.xpose.msra.mxu1 %v6624_v19 }
 0x4c6   : > { %6723 = vmatpush3.bf16.xpose.msra.mxu0 %v6720_v25  ;;  %6629 = vmatprep.subr.bf16.mxu1 %v6628_v50 }
 0x4c7   : > { %6725 = vmatprep.subr.bf16.mxu0 %v6724_v44 }
 0x4cd   : > { %6631 = vmatpush3.bf16.xpose.msra.mxu1 %v6628_v50 }
 0x4ce   : > { %6727 = vmatpush3.bf16.xpose.msra.mxu0 %v6724_v44  ;;  %6633 = vmatprep.subr.bf16.mxu1 %v6632_v58 }
 0x4cf   : > { %6729 = vmatprep.subr.bf16.mxu0 %v6728_v62 }
 0x4d5   : > { %6635 = vmatpush3.bf16.xpose.msra.mxu1 %v6632_v58 }
 0x4d6   : > { %6731 = vmatpush3.bf16.xpose.msra.mxu0 %v6728_v62  ;;  %6637 = vmatprep.subr.bf16.mxu1 %v6636_v21 }
 0x4d7   : > { %6733 = vmatprep.subr.bf16.mxu0 %v6732_v24 }
 0x4dd   : > { %6639 = vmatpush3.bf16.xpose.msra.mxu1 %v6636_v21  ;;  %v3130_v21 = vld [vmem:[#allocation8 + $0x48] sm:$0xff] }
 0x4de   : > { %6735 = vmatpush3.bf16.xpose.msra.mxu0 %v6732_v24  ;;  %6641 = vmatprep.subr.bf16.mxu1 %v6640_v13 }
 0x4df   : > { %6737 = vmatprep.subr.bf16.mxu0 %v8930_v20 }
 0x4e4   : > { %5945 = vmatmul.mubr.f32.vlgmr.msra.gmra.mrb[16].mxu1 %v8920_v40 }
 0x4e5   : > { %6113 = vmatmul.mubr.f32.vlgmr.msra.gmra.mrb[16].mxu0 %v8920_v40  ;;  %5947 = vmatprep.mubr.f32.mxu1 %v8933_v31 }
 0x4e6   : > { %6643 = vmatpush3.bf16.xpose.msra.mxu1 %v6640_v13  ;;  %6115 = vmatprep.mubr.f32.mxu0 %v8933_v31 }
 0x4e7   : > { %6739 = vmatpush3.bf16.xpose.msra.mxu0 %v8930_v20  ;;  %6645 = vmatprep.subr.bf16.mxu1 %v6644_v42  ;;  %v6648_v20 = vpack.c.bf16 %v9098_v28, %v9089_v38 }
 0x4e8   : > { %6741 = vmatprep.subr.bf16.mxu0 %v8949_v53  ;;  %5948 = vmatmul.mubr.f32.gmra.mrb[18].mxu1 %v8936_v2 }
 0x4e9   : > { %6116 = vmatmul.mubr.f32.gmra.mrb[18].mxu0 %v8936_v2  ;;  %5950 = vmatprep.mubr.f32.mxu1 %v8961_v4 }
 0x4ea   : > { %6118 = vmatprep.mubr.f32.mxu0 %v8961_v4 }
 0x4ec   : > { %5951 = vmatmul.mubr.f32.gmra.mrb[20].mxu1 %v8958_v23 }
 0x4ed   : > { %6119 = vmatmul.mubr.f32.gmra.mrb[20].mxu0 %v8958_v23  ;;  %5953 = vmatprep.mubr.f32.mxu1 %v8981_v56 }
 0x4ee   : > { %6647 = vmatpush3.bf16.xpose.msra.mxu1 %v6644_v42  ;;  %6121 = vmatprep.mubr.f32.mxu0 %v8981_v56 }
 0x4ef   : > { %6743 = vmatpush3.bf16.xpose.msra.mxu0 %v8949_v53  ;;  %6649 = vmatprep.subr.bf16.mxu1 %v6648_v20  ;;  %v6652_v53 = vpack.c.bf16 %v9109_v8, %v9104_v63 }
 0x4f0   : > { %6745 = vmatprep.subr.bf16.mxu0 %v8968_v17  ;;  %5954 = vmatmul.mubr.f32.gmra.mrb[22].mxu1 %v8978_v10 }
 0x4f1   : > { %6122 = vmatmul.mubr.f32.gmra.mrb[22].mxu0 %v8978_v10  ;;  %5956 = vmatprep.mubr.f32.mxu1 %v9001_v49 }
 0x4f2   : > { %6124 = vmatprep.mubr.f32.mxu0 %v9001_v49 }
 0x4f4   : > { %5957 = vmatmul.mubr.f32.gmra.mrb[24].mxu1 %v8998_v30 }
 0x4f5   : > { %6125 = vmatmul.mubr.f32.gmra.mrb[24].mxu0 %v8998_v30  ;;  %5959 = vmatprep.mubr.f32.mxu1 %v9021_v37 }
 0x4f6   : > { %6651 = vmatpush3.bf16.xpose.msra.mxu1 %v6648_v20  ;;  %6127 = vmatprep.mubr.f32.mxu0 %v9021_v37 }
 0x4f7   : > { %6747 = vmatpush3.bf16.xpose.msra.mxu0 %v8968_v17  ;;  %6653 = vmatprep.subr.bf16.mxu1 %v6652_v53  ;;  %v6656_v17 = vpack.c.bf16 %v9123_v54, %v9117_v18 }
 0x4f8   : > { %6749 = vmatprep.subr.bf16.mxu0 %v8988_v35  ;;  %5960 = vmatmul.mubr.f32.gmra.mrb[26].mxu1 %v9018_v9 }
 0x4f9   : > { %6128 = vmatmul.mubr.f32.gmra.mrb[26].mxu0 %v9018_v9  ;;  %5962 = vmatprep.mubr.f32.mxu1 %v9041_v45 }
 0x4fa   : > { %6130 = vmatprep.mubr.f32.mxu0 %v9041_v45 }
 0x4fc   : > { %5963 = vmatmul.mubr.f32.gmra.mrb[28].mxu1 %v9038_v0 }
 0x4fd   : > { %6131 = vmatmul.mubr.f32.gmra.mrb[28].mxu0 %v9038_v0  ;;  %5965 = vmatprep.mubr.f32.mxu1 %v9066_v34 }
 0x4fe   : > { %6655 = vmatpush3.bf16.xpose.msra.mxu1 %v6652_v53  ;;  %6133 = vmatprep.mubr.f32.mxu0 %v9066_v34 }
 0x4ff   : > { %6751 = vmatpush3.bf16.xpose.msra.mxu0 %v8988_v35  ;;  %6657 = vmatprep.subr.bf16.mxu1 %v6656_v17  ;;  %v6664_v35 = vpack.c.bf16 %v9154_v55, %v9147_v27 }
 0x500   : > { %6753 = vmatprep.subr.bf16.mxu0 %v9008_v43  ;;  %5966 = vmatmul.mubr.f32.gmra.mrb[30].mxu1 %v9062_v48 }
 0x501   : > { %6134 = vmatmul.mubr.f32.gmra.mrb[30].mxu0 %v9062_v48  ;;  %6000 = vmatprep.mubr.f32.mxu1 %v8908_v52  ;;  %v9605_v52 = vld [vmem:[#allocation22_spill] sm:$0xff] }
 0x502   : > { %6168 = vmatprep.mubr.f32.mxu0 %v8905_v3  ;;  %v6668_v3 = vpack.c.bf16 %v9168_v14, %v9161_v36 }
 0x506   : > { %6659 = vmatpush3.bf16.xpose.msra.mxu1 %v6656_v17 }
 0x507   : > { %6755 = vmatpush3.bf16.xpose.msra.mxu0 %v9008_v43  ;;  %6661 = vmatprep.subr.bf16.mxu1 %v6660_v16 }
 0x508   : > { %6757 = vmatprep.subr.bf16.mxu0 %v9028_v11 }
 0x50e   : > { %6663 = vmatpush3.bf16.xpose.msra.mxu1 %v6660_v16  ;;  %v3131_v16 = vld [vmem:[#allocation8 + $0x50] sm:$0xff] }
 0x50f   : > { %6759 = vmatpush3.bf16.xpose.msra.mxu0 %v9028_v11  ;;  %6665 = vmatprep.subr.bf16.mxu1 %v6664_v35 }
 0x510   : > { %6761 = vmatprep.subr.bf16.mxu0 %v9052_v32 }
 0x516   : > { %6667 = vmatpush3.bf16.xpose.msra.mxu1 %v6664_v35 }
 0x517   : > { %6763 = vmatpush3.bf16.xpose.msra.mxu0 %v9052_v32  ;;  %6669 = vmatprep.subr.bf16.mxu1 %v6668_v3 }
 0x518   : > { %6765 = vmatprep.subr.bf16.mxu0 %v9605_v52 }
 0x51e   : > { %6671 = vmatpush3.bf16.xpose.msra.mxu1 %v6668_v3 }
 0x51f   : > { %6767 = vmatpush3.bf16.xpose.msra.mxu0 %v9605_v52 }
 0x525   : > { %6001 = vmatmul.mubr.f32.vlgmr.msra.gmra.mrb[16].mxu1 %v9045_v29 }
 0x526   : > { %6169 = vmatmul.mubr.f32.vlgmr.msra.gmra.mrb[16].mxu0 %v8920_v40  ;;  %6003 = vmatprep.mubr.f32.mxu1 %v9083_v46 }
 0x527   : > { %6171 = vmatprep.mubr.f32.mxu0 %v8933_v31  ;;  %v3122_v31 = vld [vmem:[#allocation8 + $0x8] sm:$0xff] }
 0x529   : > { %6004 = vmatmul.mubr.f32.gmra.mrb[18].mxu1 %v9075_v51  ;;  %v3124_v51 = vld [vmem:[#allocation8 + $0x18] sm:$0xff] }
 0x52a   : > { %6172 = vmatmul.mubr.f32.gmra.mrb[18].mxu0 %v8936_v2  ;;  %6006 = vmatprep.mubr.f32.mxu1 %v9089_v38 }
 0x52b   : > { %6174 = vmatprep.mubr.f32.mxu0 %v8961_v4 }
 0x52d   : > { %6007 = vmatmul.mubr.f32.gmra.mrb[20].mxu1 %v9098_v28 }
 0x52e   : > { %6175 = vmatmul.mubr.f32.gmra.mrb[20].mxu0 %v8958_v23  ;;  %6009 = vmatprep.mubr.f32.mxu1 %v9104_v63 }
 0x52f   : > { %6177 = vmatprep.mubr.f32.mxu0 %v8981_v56 }
 0x531   : > { %6010 = vmatmul.mubr.f32.gmra.mrb[22].mxu1 %v9109_v8  ;;  %v3125_v8 = vld [vmem:[#allocation8 + $0x20] sm:$0xff] }
 0x532   : > { %6178 = vmatmul.mubr.f32.gmra.mrb[22].mxu0 %v8978_v10  ;;  %6012 = vmatprep.mubr.f32.mxu1 %v9117_v18  ;;  %v3121_v10 = vld [vmem:[#allocation8] sm:$0xff] }
 0x533   : > { %6180 = vmatprep.mubr.f32.mxu0 %v9001_v49 }
 0x535   : > { %6013 = vmatmul.mubr.f32.gmra.mrb[24].mxu1 %v9123_v54 }
 0x536   : > { %6181 = vmatmul.mubr.f32.gmra.mrb[24].mxu0 %v8998_v30  ;;  %6015 = vmatprep.mubr.f32.mxu1 %v9132_v33 }
 0x537   : > { %6183 = vmatprep.mubr.f32.mxu0 %v9021_v37 }
 0x539   : > { %6016 = vmatmul.mubr.f32.gmra.mrb[26].mxu1 %v9138_v6 }
 0x53a   : > { %6184 = vmatmul.mubr.f32.gmra.mrb[26].mxu0 %v9018_v9  ;;  %6018 = vmatprep.mubr.f32.mxu1 %v9147_v27  ;;  %v3126_v27 = vld [vmem:[#allocation8 + $0x28] sm:$0xff] }
 0x53b   : > { %6186 = vmatprep.mubr.f32.mxu0 %v9041_v45  ;;  %v3123_v45 = vld [vmem:[#allocation8 + $0x10] sm:$0xff] }
 0x53d   : > { %6019 = vmatmul.mubr.f32.gmra.mrb[28].mxu1 %v9154_v55 }
 0x53e   : > { %6187 = vmatmul.mubr.f32.gmra.mrb[28].mxu0 %v9038_v0  ;;  %6021 = vmatprep.mubr.f32.mxu1 %v9161_v36 }
 0x53f   : > { %6189 = vmatprep.mubr.f32.mxu0 %v9066_v34 }
 0x541   : > { %6022 = vmatmul.mubr.f32.gmra.mrb[30].mxu1 %v9168_v14 }
 0x542   : > { %6190 = vmatmul.mubr.f32.gmra.mrb[30].mxu0 %v9062_v48 }
 0x5f8   : > { %v6002_v40 = vpop.f32.mrb[16].mxu1 }
 0x5f9   : > { %v6170_v2 = vpop.f32.mrb[16].mxu0  ;;  %v3719_v23 = vpop.f32.mrb[17].mxu1 }
 0x5fa   : > { %v6800_v4 = vadd.f32 %v6170_v2, %v6002_v40  ;;  %v4329_v56 = vpop.f32.mrb[17].mxu0 }
 0x5fb   : > { %v6801_v30 = vadd.f32 %v4329_v56, %v3719_v23 }
 0x5fc   : > { %v4424_v49 = vmul.f32 %v6800_v4, %v3122_v31  ;;  %v6005_v43 = vpop.f32.mrb[18].mxu1  ;;  %v3132_v31 = vld [vmem:[#allocation8 + $0x58] sm:$0xff] }
 0x5fd   : > { %v4423_v9 = vmul.f32 %v6801_v30, %v3121_v10  ;;  %v6173_v37 = vpop.f32.mrb[18].mxu0  ;;  %v3733_v11 = vpop.f32.mrb[19].mxu1 }
 0x5fe   : > { %v6802_v0 = vadd.f32 %v6173_v37, %v6005_v43  ;;  %v4341_v29 = vpop.f32.mrb[19].mxu0 }
 0x5ff   : > { %v4439_v32 = vadd.f32 %v4424_v49, %v4423_v9  ;;  %v6803_v34 = vadd.f32 %v4341_v29, %v3733_v11  ;;  %v3133_v49 = vld [vmem:[#allocation8 + $0x60] sm:$0xff] }
 0x600   : > { %v6008_v48 = vpop.f32.mrb[20].mxu1  ;;  %v4426_v54 = vmul.f32 %v6802_v0, %v3124_v51  ;;  %v3134_v0 = vld [vmem:[#allocation8 + $0x68] sm:$0xff] }
 0x601   : > { %v4425_v46 = vmul.f32 %v6803_v34, %v3123_v45  ;;  %v6176_v38 = vpop.f32.mrb[20].mxu0  ;;  %v3747_v28 = vpop.f32.mrb[21].mxu1 }
 0x602   : > { %v6804_v63 = vadd.f32 %v6176_v38, %v6008_v48  ;;  %v4353_v18 = vpop.f32.mrb[21].mxu0 }
 0x603   : > { %v4440_v33 = vadd.f32 %v4439_v32, %v4425_v46  ;;  %v6805_v6 = vadd.f32 %v4353_v18, %v3747_v28  ;;  %v3135_v46 = vld [vmem:[#allocation8 + $0x70] sm:$0xff]  ;;  %v3136_v18 = vld [vmem:[#allocation8 + $0x78] sm:$0xff] }
 0x604   : > { %v6011_v55 = vpop.f32.mrb[22].mxu1  ;;  %v4428_v15 = vmul.f32 %v6804_v63, %v3126_v27 }
 0x605   : > { %v4427_v61 = vmul.f32 %v6805_v6, %v3125_v8  ;;  %v4441_v36 = vadd.f32 %v4440_v33, %v4426_v54  ;;  %v6179_v57 = vpop.f32.mrb[22].mxu0  ;;  %v3761_v14 = vpop.f32.mrb[23].mxu1 }
 0x606   : > { %v6806_v47 = vadd.f32 %v6179_v57, %v6011_v55  ;;  %v4365_v26 = vpop.f32.mrb[23].mxu0 }
 0x607   : > { %v4442_v1 = vadd.f32 %v4441_v36, %v4427_v61  ;;  %v6807_v41 = vadd.f32 %v4365_v26, %v3761_v14  ;;  %v4454_v61 = vld [vmem:[%s358_s16] sm:$0xff] }
 0x608   : > { %v6014_v12 = vpop.f32.mrb[24].mxu1  ;;  %v4430_v44 = vmul.f32 %v6806_v47, %v3128_v59 }
 0x609   : > { %v4429_v5 = vmul.f32 %v6807_v41, %v3127_v39  ;;  %v4443_v7 = vadd.f32 %v4442_v1, %v4428_v15  ;;  %v6182_v22 = vpop.f32.mrb[24].mxu0  ;;  %v3775_v19 = vpop.f32.mrb[25].mxu1 }
 0x60a   : > { %v6808_v25 = vadd.f32 %v6182_v22, %v6014_v12  ;;  %v4377_v50 = vpop.f32.mrb[25].mxu0 }
 0x60b   : > { %v4444_v58 = vadd.f32 %v4443_v7, %v4429_v5  ;;  %v6809_v62 = vadd.f32 %v4377_v50, %v3775_v19 }
 0x60c   : > { %v6017_v24 = vpop.f32.mrb[26].mxu1  ;;  %v4432_v3 = vmul.f32 %v6808_v25, %v3130_v21 }
 0x60d   : > { %v4431_v13 = vmul.f32 %v6809_v62, %v3129_v60  ;;  %v4445_v42 = vadd.f32 %v4444_v58, %v4430_v44  ;;  %v6185_v20 = vpop.f32.mrb[26].mxu0  ;;  %v3789_v53 = vpop.f32.mrb[27].mxu1 }
 0x60e   : > { %v6810_v17 = vadd.f32 %v6185_v20, %v6017_v24  ;;  %v4389_v35 = vpop.f32.mrb[27].mxu0 }
 0x60f   : > { %v4446_v52 = vadd.f32 %v4445_v42, %v4431_v13  ;;  %v6811_v40 = vadd.f32 %v4389_v35, %v3789_v53 }
 0x610   : > { %v6020_v2 = vpop.f32.mrb[28].mxu1  ;;  %v4434_v9 = vmul.f32 %v6810_v17, %v3132_v31 }
 0x611   : > { %v4433_v23 = vmul.f32 %v6811_v40, %v3131_v16  ;;  %v4447_v4 = vadd.f32 %v4446_v52, %v4432_v3  ;;  %v6188_v10 = vpop.f32.mrb[28].mxu0  ;;  %v3803_v56 = vpop.f32.mrb[29].mxu1 }
 0x612   : > { %v6812_v30 = vadd.f32 %v6188_v10, %v6020_v2  ;;  %v4401_v43 = vpop.f32.mrb[29].mxu0 }
 0x613   : > { %v4448_v37 = vadd.f32 %v4447_v4, %v4433_v23  ;;  %v6813_v11 = vadd.f32 %v4401_v43, %v3803_v56 }
 0x614   : > { %v6023_v45 = vpop.f32.mrb[30].mxu1  ;;  %v4436_v28 = vmul.f32 %v6812_v30, %v3134_v0 }
 0x615   : > { %v4435_v29 = vmul.f32 %v6813_v11, %v3133_v49  ;;  %v4449_v32 = vadd.f32 %v4448_v37, %v4434_v9  ;;  %v6191_v34 = vpop.f32.mrb[30].mxu0  ;;  %v3817_v51 = vpop.f32.mrb[31].mxu1 }
 0x616   : > { %v6814_v48 = vadd.f32 %v6191_v34, %v6023_v45  ;;  %v4413_v38 = vpop.f32.mrb[31].mxu0 }
 0x617   : > { %v4450_v63 = vadd.f32 %v4449_v32, %v4435_v29  ;;  %v6815_v8 = vadd.f32 %v4413_v38, %v3817_v51 }
 0x618   : > { %v4438_v6 = vmul.f32 %v6814_v48, %v3136_v18 }
 0x619   : > { %v4437_v54 = vmul.f32 %v6815_v8, %v3135_v46  ;;  %v4451_v33 = vadd.f32 %v4450_v63, %v4436_v28 }
 0x61b   : > { %v4452_v27 = vadd.f32 %v4451_v33, %v4437_v54 }
 0x61d   : > { %v4453_v55 = vadd.f32 %v4452_v27, %v4438_v6 }
 0x61f   : > { %vm4455_vm0 = vcmp.gt.f32.partialorder %v4453_v55, 0.8  ;;  %vm4457_vm1 = vcmp.lt.f32.partialorder %v4453_v55, 0.2 }
 0x620   : > { %v4456_v36 = vsel %vm4455_vm0, 1.0, %v4454_v61 }
 0x621   : > { %v4458_v57 = vsel %vm4457_vm1, 0.0, %v4456_v36 }
 0x622   : > { %4459 = vst [vmem:[%s353_s23] sm:$0xff] %v4458_v57 }
 0x623   : > { %7342 = shalt.err (!%p7339_p9)
}
 0x624   : > { %s7343_s17 = scalar_lea.hbm %s9286_s9, 128  ;;  %s7347_s21 = scalar_lea.hbm %s9337_s7, 256 }
 0x625   : > { %p7344_p0 = scmp.ne.s32.totalorder %s9286_s9, %s7343_s17  ;;  %p7348_p13 = scmp.lt.u32.totalorder %s9286_s9, %s9337_s7 }
 0x626   : > { %p7349_p6 = scmp.lt.u32.totalorder %s7347_s21, %s7343_s17  ;;  %p7351_p3 = scmp.lt.u32.totalorder %s7343_s17, %s9286_s9 }
 0x627   : > { %p7345_p11 = pnand %p7344_p0, %p7606_p5 }
 0x628   : > { %p7350_p10 = por %p7349_p6, %p7348_p13 }
 0x629   : > { %p7346_p8 = pneg %p7345_p11 }
 0x62a   : > { %p7352_p7 = por %p7351_p3, %p7350_p10 }
 0x62c   : > { %p7353_p12 = pnand %p7352_p7, %p7346_p8 }
 0x62e   : > { %7356 = shalt.err (!%p7353_p12)
}
 0x62f   : > { %7054 = dma.vmem_to_hbm [thread:$0]  (%p7606_p5), %s9288_s11, 128, %s9286_s9, %s4461_s13  }
 0x630 PF: > { %s9606_s23 = sld [smem:[#allocation15_spill]]  ;;  %s4486_s20 = sand.u32 1, %s7391_s24  }
 0x631   : > { %p9608_p2 = scmp.ge.s32.totalorder %s7403_s27, 2  ;;  %s4487_s30 = scalar_lea.sflag [#allocation4], %s4486_s20 }
 0x636   : > { %p9607_p1 = scmp.ne.s32.totalorder %s9606_s23, 0 }
 0x638   : > { %p7071_p4 = pnand %p9608_p2, %p9607_p1 }
 0x63a   : > { %7386 = dma.done.wait (!%p7071_p4), %s4487_s30, 128  }
 0x63b   : > { %7388 = vsyncadd (!%p7071_p4), %s4487_s30, 4294967168  ;;  %p22_p9 = scmp.ge.s32.totalorder %s7592_s22, 4   ;;  %s9609_s24 = smov %s7395_s25 }
 0x63c   : > { %s9610_s25 = smov %s7399_s26  ;;  %s9611_s26 = smov %s7602_s18 }
 0x63d   : > { %s9612_s27 = smov %s7592_s22  ;;  %24 = sbr.rel (!%p22_p9) target bundleno = 7 (0x7), region = 108 }
 0x644   :  { %4492 = vsyncpa [#allocation3], 1 }
 0x645   :  { %4494 = vsyncpa [#allocation3 + $0x1], 1 }
 0x646   :  { %4495 = vsyncpa [#allocation6], 1 }
 0x647   :  { %4496 = vsyncpa [#allocation9], 1 }
 0x648   :  { %4497 = vsyncpa [#allocation4], 1 }
 0x649   :  { %4499 = vsyncpa [#allocation4 + $0x1], 1 }

</bundles_post_ra>
